<compile_context>
chip_gen: v7x
topology: tpu7x:2x2x1
jax: 0.10.0
libtpu: 0.0.40
codegen_flags: <defaults>
</compile_context>

<pallas_src>
import functools

import jax
import jax.numpy as jnp
from jax.experimental import pallas as pl
from jax.experimental.pallas import tpu as pltpu


# ------------------------------ fused LSTM + head kernel ------------------------------
def _rnn_fused_kernel(len_ref, x_ref, wih_ref, whh_ref, b_ref, wout_ref, bout_ref,
                      out_ref, xproj, hseq, h_scr, c_scr, *, S, B, H):
    # ---- stage 1: hoisted input projection for ALL timesteps (one MXU matmul) ----
    # bf16 x bf16 -> f32 accumulation; bias added once here (not per loop step).
    xproj[...] = (jnp.dot(x_ref[...], wih_ref[...],
                          preferred_element_type=jnp.float32)
                  + b_ref[...])                                   # (S*B, 4H) f32

    # ---- stage 2: serial LSTM recurrence, fully in VMEM, fully unrolled ----------
    h_scr[...] = jnp.zeros_like(h_scr)
    c_scr[...] = jnp.zeros_like(c_scr)
    hseq[...] = jnp.zeros_like(hseq)

    lengths = len_ref[...]          # (B, 1) int32, hoisted out of the loop
    w_hh = whh_ref[...]             # (H, 4H) bf16, hoisted out of the loop

    def step(t, carry):
        base = pl.multiple_of(t * B, B)
        h = h_scr[...]              # (B, H) f32
        c = c_scr[...]              # (B, H) f32
        gates = xproj[pl.ds(base, B), :] + jnp.dot(
            h.astype(w_hh.dtype), w_hh, preferred_element_type=jnp.float32)  # (B, 4H)

        # PyTorch gate order i, f, g, o.
        # NOTE: 32-lane band slices of the 128-lane gates vreg cost a few XLU
        # selects; the roll-based "no-slice" variant needs ~5 extra XLU rolls and
        # 2-3x the EUP work at these sizes, so banded slicing is kept (XLU has slack).
        i_g = jax.nn.sigmoid(gates[:, 0 * H:1 * H])
        f_g = jax.nn.sigmoid(gates[:, 1 * H:2 * H])
        g_g = jnp.tanh(gates[:, 2 * H:3 * H])
        o_g = jax.nn.sigmoid(gates[:, 3 * H:4 * H])

        c_new = f_g * c + i_g * g_g
        h_new = o_g * jnp.tanh(c_new)

        # packing mask: only advance state / emit output while t < length[b]
        valid = lengths > t                                       # (B, 1) bool
        h_scr[...] = jnp.where(valid, h_new, h)
        c_scr[...] = jnp.where(valid, c_new, c)
        hseq[pl.ds(base, B), :] = jnp.where(valid, h_new, jnp.zeros_like(h_new))
        return carry

    jax.lax.fori_loop(0, S, step, 0, unroll=True)

    # ---- stage 3: fused Linear + log_softmax head on all S*B rows -----------------
    # Padded columns carry a -1e30 bias -> exp() == 0 -> they do not affect the lse.
    logits = (jnp.dot(hseq[...], wout_ref[...], preferred_element_type=jnp.float32)
              + bout_ref[...])                                    # (S*B, A_pad)
    m = jnp.max(logits, axis=-1, keepdims=True)
    z = logits - m
    lse = jnp.log(jnp.sum(jnp.exp(z), axis=-1, keepdims=True))
    out_ref[...] = z - lse                                        # lane-dense store


def rnn_lstm_head_forward(len_col, x_tm2d, w_ih_t, w_hh_t, bias_row,
                          w_out_pad, b_out_pad, *, S, B):
    """len_col: (B,1) int32; x_tm2d: (S*B, I) bf16 time-major-flattened (row = t*B + b).
    Returns log-softmax logits (S*B, A_pad) f32 (row = t*B + b)."""
    SB, I = x_tm2d.shape
    H = w_hh_t.shape[0]
    A_pad = w_out_pad.shape[1]
    kernel = functools.partial(_rnn_fused_kernel, S=S, B=B, H=H)

    grid_spec = pltpu.PrefetchScalarGridSpec(
        num_scalar_prefetch=0,
        grid=(1,),                                                 # single invocation
        in_specs=[
            pl.BlockSpec((B, 1), lambda i: (0, 0)),                # lengths
            pl.BlockSpec((SB, I), lambda i: (0, 0)),               # x (all timesteps)
            pl.BlockSpec((I, 4 * H), lambda i: (0, 0)),            # W_ih^T (bf16)
            pl.BlockSpec((H, 4 * H), lambda i: (0, 0)),            # W_hh^T (bf16)
            pl.BlockSpec((1, 4 * H), lambda i: (0, 0)),            # b_ih + b_hh
            pl.BlockSpec((H, A_pad), lambda i: (0, 0)),            # W_out^T (lane-padded)
            pl.BlockSpec((1, A_pad), lambda i: (0, 0)),            # b_out (lane-padded)
        ],
        out_specs=pl.BlockSpec((SB, A_pad), lambda i: (0, 0)),
        scratch_shapes=[
            pltpu.VMEM((SB, 4 * H), jnp.float32),                  # hoisted x-projection
            pltpu.VMEM((SB, H), jnp.float32),                      # hidden sequence
            pltpu.VMEM((B, H), jnp.float32),                       # h
            pltpu.VMEM((B, H), jnp.float32),                       # c
        ],
    )
    return pl.pallas_call(
        kernel,
        out_shape=jax.ShapeDtypeStruct((SB, A_pad), jnp.float32),
        grid_spec=grid_spec,
        compiler_params=pltpu.CompilerParams(
            dimension_semantics=("arbitrary",)),
    )(len_col, x_tm2d, w_ih_t, w_hh_t, bias_row, w_out_pad, b_out_pad)


# ----------------------------------- RNN module ---------------------------------------
class RNNPallas:
    def __init__(self, input_dim, hidden_dim, n_authors=15, key=None):
        self.input_dim = input_dim
        self.hidden_dim = hidden_dim
        self.n_authors = n_authors
        self.a_pad = max(128, ((n_authors + 127) // 128) * 128)   # lane-dense head width
        key = key if key is not None else jax.random.PRNGKey(0)
        k = jax.random.split(key, 6)
        s = 1.0 / jnp.sqrt(hidden_dim)
        # LSTM params (PyTorch layout: weight_ih (4H, I), weight_hh (4H, H))
        w_ih = jax.random.uniform(k[0], (4 * hidden_dim, input_dim), jnp.float32, -s, s)
        w_hh = jax.random.uniform(k[1], (4 * hidden_dim, hidden_dim), jnp.float32, -s, s)
        b_ih = jax.random.uniform(k[2], (4 * hidden_dim,), jnp.float32, -s, s)
        b_hh = jax.random.uniform(k[3], (4 * hidden_dim,), jnp.float32, -s, s)
        # Linear hidden2outputs: weight (A, H), bias (A,)
        w_out = jax.random.uniform(k[4], (n_authors, hidden_dim), jnp.float32, -s, s)
        b_out = jax.random.uniform(k[5], (n_authors,), jnp.float32, -s, s)

        # MXU-friendly (row @ weight) layouts; LSTM matmul inputs stored bf16
        # (f32 accumulation and f32 elementwise state math happen in-kernel).
        self.w_ih_t = w_ih.T.astype(jnp.bfloat16)                 # (I, 4H)
        self.w_hh_t = w_hh.T.astype(jnp.bfloat16)                 # (H, 4H)
        self.bias = (b_ih + b_hh).reshape(1, 4 * hidden_dim)      # (1, 4H) f32
        # Head lane-padded to 128: zero weight columns, -1e30 bias on pad columns so
        # they drop out of the softmax; wrapper slices back to n_authors.
        self.w_out_pad = (jnp.zeros((hidden_dim, self.a_pad), jnp.float32)
                          .at[:, :n_authors].set(w_out.T))        # (H, A_pad)
        self.b_out_pad = (jnp.full((1, self.a_pad), -1e30, jnp.float32)
                          .at[0, :n_authors].set(b_out))          # (1, A_pad)

    @functools.partial(jax.jit, static_argnums=0)
    def forward(self, x, x_lengths):
        """x: (batch, seq_len, input_dim); x_lengths: (batch,) descending ints."""
        B, S, I = x.shape
        # time-major flatten (row = t*B + b); tiny XLA copy, keeps in-kernel slices contiguous
        x_tm2d = jnp.transpose(x, (1, 0, 2)).reshape(S * B, I).astype(jnp.bfloat16)
        len_col = x_lengths.astype(jnp.int32).reshape(B, 1)
        out_pad = rnn_lstm_head_forward(
            len_col, x_tm2d, self.w_ih_t, self.w_hh_t, self.bias,
            self.w_out_pad, self.b_out_pad, S=S, B=B)             # (S*B, A_pad)
        # back to batch_first and real class count
        logp = (out_pad.reshape(S, B, self.a_pad)
                .transpose(1, 0, 2)[:, :, :self.n_authors])       # (B, S, A)
        return logp


# -------------------------------- pure-JAX reference ----------------------------------
def _reference_forward(x, x_lengths, model):
    """Pure-jnp reference emulating the kernel's bf16 quantization of MXU inputs."""
    B, S, I = x.shape
    H, A = model.hidden_dim, model.n_authors
    w_ih = model.w_ih_t.astype(jnp.float32)
    w_hh = model.w_hh_t.astype(jnp.float32)
    bias = model.bias
    xq = x.astype(jnp.bfloat16).astype(jnp.float32)
    h = jnp.zeros((B, H), jnp.float32)
    c = jnp.zeros((B, H), jnp.float32)
    hs = []
    for t in range(S):
        hq = h.astype(jnp.bfloat16).astype(jnp.float32)
        gates = xq[:, t, :] @ w_ih + bias + hq @ w_hh
        i_g = jax.nn.sigmoid(gates[:, 0 * H:1 * H])
        f_g = jax.nn.sigmoid(gates[:, 1 * H:2 * H])
        g_g = jnp.tanh(gates[:, 2 * H:3 * H])
        o_g = jax.nn.sigmoid(gates[:, 3 * H:4 * H])
        c_new = f_g * c + i_g * g_g
        h_new = o_g * jnp.tanh(c_new)
        valid = (x_lengths > t)[:, None]
        h = jnp.where(valid, h_new, h)
        c = jnp.where(valid, c_new, c)
        hs.append(jnp.where(valid, h_new, 0.0))
    hseq = jnp.stack(hs, axis=1).reshape(B * S, H)
    logits = hseq @ model.w_out_pad[:, :A] + model.b_out_pad[0, :A]
    return jax.nn.log_softmax(logits, axis=-1).reshape(B, S, A)


# --------------------------------------- main ------------------------------------------
if __name__ == "__main__":
    batch, seq_len, input_dim, hidden_dim, n_authors = 8, 8, 16, 32, 15

    key = jax.random.PRNGKey(0)
    k_x, k_p = jax.random.split(key)
    x = jax.random.normal(k_x, (batch, seq_len, input_dim), jnp.float32)
    # descending lengths (pack_padded_sequence requirement)
    x_lengths = jnp.array([8, 8, 7, 6, 5, 4, 3, 2], dtype=jnp.int32)
    # zero out padded positions of the input (packed data never sees them)
    t_ids = jnp.arange(seq_len)[None, :, None]
    x = jnp.where(t_ids < x_lengths[:, None, None], x, 0.0)

    model = RNNPallas(input_dim, hidden_dim, n_authors, key=k_p)
    out = model.forward(x, x_lengths)
    out = jax.block_until_ready(out)

    assert out.shape == (batch, seq_len, n_authors)
    assert bool(jnp.all(jnp.isfinite(out)))
    # each row of log-softmax must sum (in prob space) to ~1
    probs_sum = jnp.sum(jnp.exp(out), axis=-1)
    assert bool(jnp.allclose(probs_sum, 1.0, atol=1e-4))

    ref = _reference_forward(x, x_lengths, model)
    max_err = float(jnp.max(jnp.abs(out - ref)))
    assert max_err < 2e-2, f"mismatch vs reference: {max_err}"

    print("KERNEL_OK")
</pallas_src>

<mosaic_0001>
module attributes {stable_mosaic.version = 11 : i64} {
  func.func @_rnn_fused_kernel(%arg0: i32, %arg1: memref<8x1xi32, #tpu.memory_space<vmem>>, %arg2: memref<64x16xbf16, #tpu.memory_space<vmem>>, %arg3: memref<16x128xbf16, #tpu.memory_space<vmem>>, %arg4: memref<32x128xbf16, #tpu.memory_space<vmem>>, %arg5: memref<1x128xf32, #tpu.memory_space<vmem>>, %arg6: memref<32x128xf32, #tpu.memory_space<vmem>>, %arg7: memref<1x128xf32, #tpu.memory_space<vmem>>, %arg8: memref<64x128xf32, #tpu.memory_space<vmem>>, %arg9: memref<64x128xf32, #tpu.memory_space<vmem>>, %arg10: memref<64x32xf32, #tpu.memory_space<vmem>>, %arg11: memref<8x32xf32, #tpu.memory_space<vmem>>, %arg12: memref<8x32xf32, #tpu.memory_space<vmem>>) attributes {dimension_semantics = [#tpu.dimension_semantics<arbitrary>], iteration_bounds = array<i64: 1>, scalar_prefetch = 0 : i64, scratch_operands = 4 : i64, tpu.core_type = #tpu.core_type<tc>, window_params = [{pipeline_mode = #tpu.pipeline_mode<synchronous>, transform_indices = @transform_0, window_bounds = array<i64: 8, 1>}, {pipeline_mode = #tpu.pipeline_mode<synchronous>, transform_indices = @transform_1, window_bounds = array<i64: 64, 16>}, {pipeline_mode = #tpu.pipeline_mode<synchronous>, transform_indices = @transform_2, window_bounds = array<i64: 16, 128>}, {pipeline_mode = #tpu.pipeline_mode<synchronous>, transform_indices = @transform_3, window_bounds = array<i64: 32, 128>}, {pipeline_mode = #tpu.pipeline_mode<synchronous>, transform_indices = @transform_4, window_bounds = array<i64: 1, 128>}, {pipeline_mode = #tpu.pipeline_mode<synchronous>, transform_indices = @transform_5, window_bounds = array<i64: 32, 128>}, {pipeline_mode = #tpu.pipeline_mode<synchronous>, transform_indices = @transform_6, window_bounds = array<i64: 1, 128>}, {pipeline_mode = #tpu.pipeline_mode<synchronous>, transform_indices = @transform_7, window_bounds = array<i64: 64, 128>}]} {
    %c0 = arith.constant 0 : index
    %c0_0 = arith.constant 0 : index
    %0 = vector.load %arg2[%c0, %c0_0] : memref<64x16xbf16, #tpu.memory_space<vmem>>, vector<64x16xbf16>
    %c0_1 = arith.constant 0 : index
    %c0_2 = arith.constant 0 : index
    %1 = vector.load %arg3[%c0_1, %c0_2] : memref<16x128xbf16, #tpu.memory_space<vmem>>, vector<16x128xbf16>
    %cst = arith.constant dense<0.000000e+00> : vector<64x128xf32>
    %2 = tpu.matmul %0, %1, %cst {dimension_numbers = #tpu.dot_dimension_numbers<[1], [0], [0], [1], [0, 0, 1, 1], [], []>} : vector<64x16xbf16>, vector<16x128xbf16>, vector<64x128xf32> -> vector<64x128xf32>
    %c0_3 = arith.constant 0 : index
    %c0_4 = arith.constant 0 : index
    %3 = vector.load %arg5[%c0_3, %c0_4] : memref<1x128xf32, #tpu.memory_space<vmem>>, vector<1x128xf32>
    %4 = vector.broadcast %3 : vector<1x128xf32> to vector<64x128xf32>
    %5 = arith.addf %2, %4 : vector<64x128xf32>
    %c0_5 = arith.constant 0 : index
    %c0_6 = arith.constant 0 : index
    %6 = vector.load %arg9[%c0_5, %c0_6] : memref<64x128xf32, #tpu.memory_space<vmem>>, vector<64x128xf32>
    tpu.vector_store %arg9[%c0_5, %c0_6], %5 {strides = array<i32>} : memref<64x128xf32, #tpu.memory_space<vmem>>, vector<64x128xf32>,
    %cst_7 = arith.constant 0.000000e+00 : f32
    %7 = vector.broadcast %cst_7 : f32 to vector<8x32xf32>
    %c0_8 = arith.constant 0 : index
    %c0_9 = arith.constant 0 : index
    %8 = vector.load %arg11[%c0_8, %c0_9] : memref<8x32xf32, #tpu.memory_space<vmem>>, vector<8x32xf32>
    tpu.vector_store %arg11[%c0_8, %c0_9], %7 {strides = array<i32>} : memref<8x32xf32, #tpu.memory_space<vmem>>, vector<8x32xf32>,
    %cst_10 = arith.constant 0.000000e+00 : f32
    %9 = vector.broadcast %cst_10 : f32 to vector<8x32xf32>
    %c0_11 = arith.constant 0 : index
    %c0_12 = arith.constant 0 : index
    %10 = vector.load %arg12[%c0_11, %c0_12] : memref<8x32xf32, #tpu.memory_space<vmem>>, vector<8x32xf32>
    tpu.vector_store %arg12[%c0_11, %c0_12], %9 {strides = array<i32>} : memref<8x32xf32, #tpu.memory_space<vmem>>, vector<8x32xf32>,
    %cst_13 = arith.constant 0.000000e+00 : f32
    %11 = vector.broadcast %cst_13 : f32 to vector<64x32xf32>
    %c0_14 = arith.constant 0 : index
    %c0_15 = arith.constant 0 : index
    %12 = vector.load %arg10[%c0_14, %c0_15] : memref<64x32xf32, #tpu.memory_space<vmem>>, vector<64x32xf32>
    tpu.vector_store %arg10[%c0_14, %c0_15], %11 {strides = array<i32>} : memref<64x32xf32, #tpu.memory_space<vmem>>, vector<64x32xf32>,
    %c0_16 = arith.constant 0 : index
    %c0_17 = arith.constant 0 : index
    %13 = vector.load %arg1[%c0_16, %c0_17] : memref<8x1xi32, #tpu.memory_space<vmem>>, vector<8x1xi32>
    %c0_18 = arith.constant 0 : index
    %c0_19 = arith.constant 0 : index
    %14 = vector.load %arg4[%c0_18, %c0_19] : memref<32x128xbf16, #tpu.memory_space<vmem>>, vector<32x128xbf16>
    %c0_i32 = arith.constant 0 : i32
    %c8_i32 = arith.constant 8 : i32
    %15 = arith.muli %c0_i32, %c8_i32 : i32
    %16 = tpu.assume_multiple %15, 8 : i32
    %c0_20 = arith.constant 0 : index
    %c0_21 = arith.constant 0 : index
    %17 = vector.load %arg11[%c0_20, %c0_21] : memref<8x32xf32, #tpu.memory_space<vmem>>, vector<8x32xf32>
    %c0_22 = arith.constant 0 : index
    %c0_23 = arith.constant 0 : index
    %18 = vector.load %arg12[%c0_22, %c0_23] : memref<8x32xf32, #tpu.memory_space<vmem>>, vector<8x32xf32>
    %19 = arith.index_cast %16 : i32 to index
    %c0_24 = arith.constant 0 : index
    %20 = vector.load %arg9[%19, %c0_24] : memref<64x128xf32, #tpu.memory_space<vmem>>, vector<8x128xf32>
    %21 = arith.truncf %17 : vector<8x32xf32> to vector<8x32xbf16>
    %cst_25 = arith.constant dense<0.000000e+00> : vector<8x128xf32>
    %22 = tpu.matmul %21, %14, %cst_25 {dimension_numbers = #tpu.dot_dimension_numbers<[1], [0], [0], [1], [0, 0, 1, 1], [], []>} : vector<8x32xbf16>, vector<32x128xbf16>, vector<8x128xf32> -> vector<8x128xf32>
    %23 = arith.addf %20, %22 : vector<8x128xf32>
    %24 = vector.extract_strided_slice %23 {offsets = [0, 0], sizes = [8, 32], strides = [1, 1]} : vector<8x128xf32> to vector<8x32xf32>
    %25 = arith.negf %24 : vector<8x32xf32>
    %26 = math.exp %25 : vector<8x32xf32>
    %cst_26 = arith.constant 1.000000e+00 : f32
    %27 = vector.broadcast %cst_26 : f32 to vector<8x32xf32>
    %28 = arith.addf %27, %26 : vector<8x32xf32>
    %29 = arith.divf %27, %28 : vector<8x32xf32>
    %30 = vector.extract_strided_slice %23 {offsets = [0, 32], sizes = [8, 32], strides = [1, 1]} : vector<8x128xf32> to vector<8x32xf32>
    %31 = arith.negf %30 : vector<8x32xf32>
    %32 = math.exp %31 : vector<8x32xf32>
    %cst_27 = arith.constant 1.000000e+00 : f32
    %33 = vector.broadcast %cst_27 : f32 to vector<8x32xf32>
    %34 = arith.addf %33, %32 : vector<8x32xf32>
    %35 = arith.divf %33, %34 : vector<8x32xf32>
    %36 = vector.extract_strided_slice %23 {offsets = [0, 64], sizes = [8, 32], strides = [1, 1]} : vector<8x128xf32> to vector<8x32xf32>
    %37 = math.tanh %36 : vector<8x32xf32>
    %38 = vector.extract_strided_slice %23 {offsets = [0, 96], sizes = [8, 32], strides = [1, 1]} : vector<8x128xf32> to vector<8x32xf32>
    %39 = arith.negf %38 : vector<8x32xf32>
    %40 = math.exp %39 : vector<8x32xf32>
    %cst_28 = arith.constant 1.000000e+00 : f32
    %41 = vector.broadcast %cst_28 : f32 to vector<8x32xf32>
    %42 = arith.addf %41, %40 : vector<8x32xf32>
    %43 = arith.divf %41, %42 : vector<8x32xf32>
    %44 = arith.mulf %35, %18 : vector<8x32xf32>
    %45 = arith.mulf %29, %37 : vector<8x32xf32>
    %46 = arith.addf %44, %45 : vector<8x32xf32>
    %47 = math.tanh %46 : vector<8x32xf32>
    %48 = arith.mulf %43, %47 : vector<8x32xf32>
    %49 = vector.broadcast %c0_i32 : i32 to vector<8x1xi32>
    %50 = arith.cmpi sgt, %13, %49 : vector<8x1xi32>
    %51 = vector.shape_cast %50 : vector<8x1xi1> to vector<8x1xi1>
    %52 = vector.broadcast %51 : vector<8x1xi1> to vector<8x32xi1>
    %53 = arith.select %52, %48, %17 : vector<8x32xi1>, vector<8x32xf32>
    %c0_29 = arith.constant 0 : index
    %c0_30 = arith.constant 0 : index
    %54 = vector.load %arg11[%c0_29, %c0_30] : memref<8x32xf32, #tpu.memory_space<vmem>>, vector<8x32xf32>
    tpu.vector_store %arg11[%c0_29, %c0_30], %53 {strides = array<i32>} : memref<8x32xf32, #tpu.memory_space<vmem>>, vector<8x32xf32>,
    %55 = vector.shape_cast %50 : vector<8x1xi1> to vector<8x1xi1>
    %56 = vector.broadcast %55 : vector<8x1xi1> to vector<8x32xi1>
    %57 = arith.select %56, %46, %18 : vector<8x32xi1>, vector<8x32xf32>
    %c0_31 = arith.constant 0 : index
    %c0_32 = arith.constant 0 : index
    %58 = vector.load %arg12[%c0_31, %c0_32] : memref<8x32xf32, #tpu.memory_space<vmem>>, vector<8x32xf32>
    tpu.vector_store %arg12[%c0_31, %c0_32], %57 {strides = array<i32>} : memref<8x32xf32, #tpu.memory_space<vmem>>, vector<8x32xf32>,
    %cst_33 = arith.constant 0.000000e+00 : f32
    %59 = vector.broadcast %cst_33 : f32 to vector<8x32xf32>
    %60 = vector.shape_cast %50 : vector<8x1xi1> to vector<8x1xi1>
    %61 = vector.broadcast %60 : vector<8x1xi1> to vector<8x32xi1>
    %62 = arith.select %61, %48, %59 : vector<8x32xi1>, vector<8x32xf32>
    %63 = arith.index_cast %16 : i32 to index
    %c0_34 = arith.constant 0 : index
    %64 = vector.load %arg10[%63, %c0_34] : memref<64x32xf32, #tpu.memory_space<vmem>>, vector<8x32xf32>
    tpu.vector_store %arg10[%63, %c0_34], %62 {strides = array<i32>} : memref<64x32xf32, #tpu.memory_space<vmem>>, vector<8x32xf32>,
    %c1_i32 = arith.constant 1 : i32
    %c8_i32_35 = arith.constant 8 : i32
    %65 = arith.muli %c1_i32, %c8_i32_35 : i32
    %66 = tpu.assume_multiple %65, 8 : i32
    %c0_36 = arith.constant 0 : index
    %c0_37 = arith.constant 0 : index
    %67 = vector.load %arg11[%c0_36, %c0_37] : memref<8x32xf32, #tpu.memory_space<vmem>>, vector<8x32xf32>
    %c0_38 = arith.constant 0 : index
    %c0_39 = arith.constant 0 : index
    %68 = vector.load %arg12[%c0_38, %c0_39] : memref<8x32xf32, #tpu.memory_space<vmem>>, vector<8x32xf32>
    %69 = arith.index_cast %66 : i32 to index
    %c0_40 = arith.constant 0 : index
    %70 = vector.load %arg9[%69, %c0_40] : memref<64x128xf32, #tpu.memory_space<vmem>>, vector<8x128xf32>
    %71 = arith.truncf %67 : vector<8x32xf32> to vector<8x32xbf16>
    %cst_41 = arith.constant dense<0.000000e+00> : vector<8x128xf32>
    %72 = tpu.matmul %71, %14, %cst_41 {dimension_numbers = #tpu.dot_dimension_numbers<[1], [0], [0], [1], [0, 0, 1, 1], [], []>} : vector<8x32xbf16>, vector<32x128xbf16>, vector<8x128xf32> -> vector<8x128xf32>
    %73 = arith.addf %70, %72 : vector<8x128xf32>
    %74 = vector.extract_strided_slice %73 {offsets = [0, 0], sizes = [8, 32], strides = [1, 1]} : vector<8x128xf32> to vector<8x32xf32>
    %75 = arith.negf %74 : vector<8x32xf32>
    %76 = math.exp %75 : vector<8x32xf32>
    %cst_42 = arith.constant 1.000000e+00 : f32
    %77 = vector.broadcast %cst_42 : f32 to vector<8x32xf32>
    %78 = arith.addf %77, %76 : vector<8x32xf32>
    %79 = arith.divf %77, %78 : vector<8x32xf32>
    %80 = vector.extract_strided_slice %73 {offsets = [0, 32], sizes = [8, 32], strides = [1, 1]} : vector<8x128xf32> to vector<8x32xf32>
    %81 = arith.negf %80 : vector<8x32xf32>
    %82 = math.exp %81 : vector<8x32xf32>
    %cst_43 = arith.constant 1.000000e+00 : f32
    %83 = vector.broadcast %cst_43 : f32 to vector<8x32xf32>
    %84 = arith.addf %83, %82 : vector<8x32xf32>
    %85 = arith.divf %83, %84 : vector<8x32xf32>
    %86 = vector.extract_strided_slice %73 {offsets = [0, 64], sizes = [8, 32], strides = [1, 1]} : vector<8x128xf32> to vector<8x32xf32>
    %87 = math.tanh %86 : vector<8x32xf32>
    %88 = vector.extract_strided_slice %73 {offsets = [0, 96], sizes = [8, 32], strides = [1, 1]} : vector<8x128xf32> to vector<8x32xf32>
    %89 = arith.negf %88 : vector<8x32xf32>
    %90 = math.exp %89 : vector<8x32xf32>
    %cst_44 = arith.constant 1.000000e+00 : f32
    %91 = vector.broadcast %cst_44 : f32 to vector<8x32xf32>
    %92 = arith.addf %91, %90 : vector<8x32xf32>
    %93 = arith.divf %91, %92 : vector<8x32xf32>
    %94 = arith.mulf %85, %68 : vector<8x32xf32>
    %95 = arith.mulf %79, %87 : vector<8x32xf32>
    %96 = arith.addf %94, %95 : vector<8x32xf32>
    %97 = math.tanh %96 : vector<8x32xf32>
    %98 = arith.mulf %93, %97 : vector<8x32xf32>
    %99 = vector.broadcast %c1_i32 : i32 to vector<8x1xi32>
    %100 = arith.cmpi sgt, %13, %99 : vector<8x1xi32>
    %101 = vector.shape_cast %100 : vector<8x1xi1> to vector<8x1xi1>
    %102 = vector.broadcast %101 : vector<8x1xi1> to vector<8x32xi1>
    %103 = arith.select %102, %98, %67 : vector<8x32xi1>, vector<8x32xf32>
    %c0_45 = arith.constant 0 : index
    %c0_46 = arith.constant 0 : index
    %104 = vector.load %arg11[%c0_45, %c0_46] : memref<8x32xf32, #tpu.memory_space<vmem>>, vector<8x32xf32>
    tpu.vector_store %arg11[%c0_45, %c0_46], %103 {strides = array<i32>} : memref<8x32xf32, #tpu.memory_space<vmem>>, vector<8x32xf32>,
    %105 = vector.shape_cast %100 : vector<8x1xi1> to vector<8x1xi1>
    %106 = vector.broadcast %105 : vector<8x1xi1> to vector<8x32xi1>
    %107 = arith.select %106, %96, %68 : vector<8x32xi1>, vector<8x32xf32>
    %c0_47 = arith.constant 0 : index
    %c0_48 = arith.constant 0 : index
    %108 = vector.load %arg12[%c0_47, %c0_48] : memref<8x32xf32, #tpu.memory_space<vmem>>, vector<8x32xf32>
    tpu.vector_store %arg12[%c0_47, %c0_48], %107 {strides = array<i32>} : memref<8x32xf32, #tpu.memory_space<vmem>>, vector<8x32xf32>,
    %cst_49 = arith.constant 0.000000e+00 : f32
    %109 = vector.broadcast %cst_49 : f32 to vector<8x32xf32>
    %110 = vector.shape_cast %100 : vector<8x1xi1> to vector<8x1xi1>
    %111 = vector.broadcast %110 : vector<8x1xi1> to vector<8x32xi1>
    %112 = arith.select %111, %98, %109 : vector<8x32xi1>, vector<8x32xf32>
    %113 = arith.index_cast %66 : i32 to index
    %c0_50 = arith.constant 0 : index
    %114 = vector.load %arg10[%113, %c0_50] : memref<64x32xf32, #tpu.memory_space<vmem>>, vector<8x32xf32>
    tpu.vector_store %arg10[%113, %c0_50], %112 {strides = array<i32>} : memref<64x32xf32, #tpu.memory_space<vmem>>, vector<8x32xf32>,
    %c2_i32 = arith.constant 2 : i32
    %c8_i32_51 = arith.constant 8 : i32
    %115 = arith.muli %c2_i32, %c8_i32_51 : i32
    %116 = tpu.assume_multiple %115, 8 : i32
    %c0_52 = arith.constant 0 : index
    %c0_53 = arith.constant 0 : index
    %117 = vector.load %arg11[%c0_52, %c0_53] : memref<8x32xf32, #tpu.memory_space<vmem>>, vector<8x32xf32>
    %c0_54 = arith.constant 0 : index
    %c0_55 = arith.constant 0 : index
    %118 = vector.load %arg12[%c0_54, %c0_55] : memref<8x32xf32, #tpu.memory_space<vmem>>, vector<8x32xf32>
    %119 = arith.index_cast %116 : i32 to index
    %c0_56 = arith.constant 0 : index
    %120 = vector.load %arg9[%119, %c0_56] : memref<64x128xf32, #tpu.memory_space<vmem>>, vector<8x128xf32>
    %121 = arith.truncf %117 : vector<8x32xf32> to vector<8x32xbf16>
    %cst_57 = arith.constant dense<0.000000e+00> : vector<8x128xf32>
    %122 = tpu.matmul %121, %14, %cst_57 {dimension_numbers = #tpu.dot_dimension_numbers<[1], [0], [0], [1], [0, 0, 1, 1], [], []>} : vector<8x32xbf16>, vector<32x128xbf16>, vector<8x128xf32> -> vector<8x128xf32>
    %123 = arith.addf %120, %122 : vector<8x128xf32>
    %124 = vector.extract_strided_slice %123 {offsets = [0, 0], sizes = [8, 32], strides = [1, 1]} : vector<8x128xf32> to vector<8x32xf32>
    %125 = arith.negf %124 : vector<8x32xf32>
    %126 = math.exp %125 : vector<8x32xf32>
    %cst_58 = arith.constant 1.000000e+00 : f32
    %127 = vector.broadcast %cst_58 : f32 to vector<8x32xf32>
    %128 = arith.addf %127, %126 : vector<8x32xf32>
    %129 = arith.divf %127, %128 : vector<8x32xf32>
    %130 = vector.extract_strided_slice %123 {offsets = [0, 32], sizes = [8, 32], strides = [1, 1]} : vector<8x128xf32> to vector<8x32xf32>
    %131 = arith.negf %130 : vector<8x32xf32>
    %132 = math.exp %131 : vector<8x32xf32>
    %cst_59 = arith.constant 1.000000e+00 : f32
    %133 = vector.broadcast %cst_59 : f32 to vector<8x32xf32>
    %134 = arith.addf %133, %132 : vector<8x32xf32>
    %135 = arith.divf %133, %134 : vector<8x32xf32>
    %136 = vector.extract_strided_slice %123 {offsets = [0, 64], sizes = [8, 32], strides = [1, 1]} : vector<8x128xf32> to vector<8x32xf32>
    %137 = math.tanh %136 : vector<8x32xf32>
    %138 = vector.extract_strided_slice %123 {offsets = [0, 96], sizes = [8, 32], strides = [1, 1]} : vector<8x128xf32> to vector<8x32xf32>
    %139 = arith.negf %138 : vector<8x32xf32>
    %140 = math.exp %139 : vector<8x32xf32>
    %cst_60 = arith.constant 1.000000e+00 : f32
    %141 = vector.broadcast %cst_60 : f32 to vector<8x32xf32>
    %142 = arith.addf %141, %140 : vector<8x32xf32>
    %143 = arith.divf %141, %142 : vector<8x32xf32>
    %144 = arith.mulf %135, %118 : vector<8x32xf32>
    %145 = arith.mulf %129, %137 : vector<8x32xf32>
    %146 = arith.addf %144, %145 : vector<8x32xf32>
    %147 = math.tanh %146 : vector<8x32xf32>
    %148 = arith.mulf %143, %147 : vector<8x32xf32>
    %149 = vector.broadcast %c2_i32 : i32 to vector<8x1xi32>
    %150 = arith.cmpi sgt, %13, %149 : vector<8x1xi32>
    %151 = vector.shape_cast %150 : vector<8x1xi1> to vector<8x1xi1>
    %152 = vector.broadcast %151 : vector<8x1xi1> to vector<8x32xi1>
    %153 = arith.select %152, %148, %117 : vector<8x32xi1>, vector<8x32xf32>
    %c0_61 = arith.constant 0 : index
    %c0_62 = arith.constant 0 : index
    %154 = vector.load %arg11[%c0_61, %c0_62] : memref<8x32xf32, #tpu.memory_space<vmem>>, vector<8x32xf32>
    tpu.vector_store %arg11[%c0_61, %c0_62], %153 {strides = array<i32>} : memref<8x32xf32, #tpu.memory_space<vmem>>, vector<8x32xf32>,
    %155 = vector.shape_cast %150 : vector<8x1xi1> to vector<8x1xi1>
    %156 = vector.broadcast %155 : vector<8x1xi1> to vector<8x32xi1>
    %157 = arith.select %156, %146, %118 : vector<8x32xi1>, vector<8x32xf32>
    %c0_63 = arith.constant 0 : index
    %c0_64 = arith.constant 0 : index
    %158 = vector.load %arg12[%c0_63, %c0_64] : memref<8x32xf32, #tpu.memory_space<vmem>>, vector<8x32xf32>
    tpu.vector_store %arg12[%c0_63, %c0_64], %157 {strides = array<i32>} : memref<8x32xf32, #tpu.memory_space<vmem>>, vector<8x32xf32>,
    %cst_65 = arith.constant 0.000000e+00 : f32
    %159 = vector.broadcast %cst_65 : f32 to vector<8x32xf32>
    %160 = vector.shape_cast %150 : vector<8x1xi1> to vector<8x1xi1>
    %161 = vector.broadcast %160 : vector<8x1xi1> to vector<8x32xi1>
    %162 = arith.select %161, %148, %159 : vector<8x32xi1>, vector<8x32xf32>
    %163 = arith.index_cast %116 : i32 to index
    %c0_66 = arith.constant 0 : index
    %164 = vector.load %arg10[%163, %c0_66] : memref<64x32xf32, #tpu.memory_space<vmem>>, vector<8x32xf32>
    tpu.vector_store %arg10[%163, %c0_66], %162 {strides = array<i32>} : memref<64x32xf32, #tpu.memory_space<vmem>>, vector<8x32xf32>,
    %c3_i32 = arith.constant 3 : i32
    %c8_i32_67 = arith.constant 8 : i32
    %165 = arith.muli %c3_i32, %c8_i32_67 : i32
    %166 = tpu.assume_multiple %165, 8 : i32
    %c0_68 = arith.constant 0 : index
    %c0_69 = arith.constant 0 : index
    %167 = vector.load %arg11[%c0_68, %c0_69] : memref<8x32xf32, #tpu.memory_space<vmem>>, vector<8x32xf32>
    %c0_70 = arith.constant 0 : index
    %c0_71 = arith.constant 0 : index
    %168 = vector.load %arg12[%c0_70, %c0_71] : memref<8x32xf32, #tpu.memory_space<vmem>>, vector<8x32xf32>
    %169 = arith.index_cast %166 : i32 to index
    %c0_72 = arith.constant 0 : index
    %170 = vector.load %arg9[%169, %c0_72] : memref<64x128xf32, #tpu.memory_space<vmem>>, vector<8x128xf32>
    %171 = arith.truncf %167 : vector<8x32xf32> to vector<8x32xbf16>
    %cst_73 = arith.constant dense<0.000000e+00> : vector<8x128xf32>
    %172 = tpu.matmul %171, %14, %cst_73 {dimension_numbers = #tpu.dot_dimension_numbers<[1], [0], [0], [1], [0, 0, 1, 1], [], []>} : vector<8x32xbf16>, vector<32x128xbf16>, vector<8x128xf32> -> vector<8x128xf32>
    %173 = arith.addf %170, %172 : vector<8x128xf32>
    %174 = vector.extract_strided_slice %173 {offsets = [0, 0], sizes = [8, 32], strides = [1, 1]} : vector<8x128xf32> to vector<8x32xf32>
    %175 = arith.negf %174 : vector<8x32xf32>
    %176 = math.exp %175 : vector<8x32xf32>
    %cst_74 = arith.constant 1.000000e+00 : f32
    %177 = vector.broadcast %cst_74 : f32 to vector<8x32xf32>
    %178 = arith.addf %177, %176 : vector<8x32xf32>
    %179 = arith.divf %177, %178 : vector<8x32xf32>
    %180 = vector.extract_strided_slice %173 {offsets = [0, 32], sizes = [8, 32], strides = [1, 1]} : vector<8x128xf32> to vector<8x32xf32>
    %181 = arith.negf %180 : vector<8x32xf32>
    %182 = math.exp %181 : vector<8x32xf32>
    %cst_75 = arith.constant 1.000000e+00 : f32
    %183 = vector.broadcast %cst_75 : f32 to vector<8x32xf32>
    %184 = arith.addf %183, %182 : vector<8x32xf32>
    %185 = arith.divf %183, %184 : vector<8x32xf32>
    %186 = vector.extract_strided_slice %173 {offsets = [0, 64], sizes = [8, 32], strides = [1, 1]} : vector<8x128xf32> to vector<8x32xf32>
    %187 = math.tanh %186 : vector<8x32xf32>
    %188 = vector.extract_strided_slice %173 {offsets = [0, 96], sizes = [8, 32], strides = [1, 1]} : vector<8x128xf32> to vector<8x32xf32>
    %189 = arith.negf %188 : vector<8x32xf32>
    %190 = math.exp %189 : vector<8x32xf32>
    %cst_76 = arith.constant 1.000000e+00 : f32
    %191 = vector.broadcast %cst_76 : f32 to vector<8x32xf32>
    %192 = arith.addf %191, %190 : vector<8x32xf32>
    %193 = arith.divf %191, %192 : vector<8x32xf32>
    %194 = arith.mulf %185, %168 : vector<8x32xf32>
    %195 = arith.mulf %179, %187 : vector<8x32xf32>
    %196 = arith.addf %194, %195 : vector<8x32xf32>
    %197 = math.tanh %196 : vector<8x32xf32>
    %198 = arith.mulf %193, %197 : vector<8x32xf32>
    %199 = vector.broadcast %c3_i32 : i32 to vector<8x1xi32>
    %200 = arith.cmpi sgt, %13, %199 : vector<8x1xi32>
    %201 = vector.shape_cast %200 : vector<8x1xi1> to vector<8x1xi1>
    %202 = vector.broadcast %201 : vector<8x1xi1> to vector<8x32xi1>
    %203 = arith.select %202, %198, %167 : vector<8x32xi1>, vector<8x32xf32>
    %c0_77 = arith.constant 0 : index
    %c0_78 = arith.constant 0 : index
    %204 = vector.load %arg11[%c0_77, %c0_78] : memref<8x32xf32, #tpu.memory_space<vmem>>, vector<8x32xf32>
    tpu.vector_store %arg11[%c0_77, %c0_78], %203 {strides = array<i32>} : memref<8x32xf32, #tpu.memory_space<vmem>>, vector<8x32xf32>,
    %205 = vector.shape_cast %200 : vector<8x1xi1> to vector<8x1xi1>
    %206 = vector.broadcast %205 : vector<8x1xi1> to vector<8x32xi1>
    %207 = arith.select %206, %196, %168 : vector<8x32xi1>, vector<8x32xf32>
    %c0_79 = arith.constant 0 : index
    %c0_80 = arith.constant 0 : index
    %208 = vector.load %arg12[%c0_79, %c0_80] : memref<8x32xf32, #tpu.memory_space<vmem>>, vector<8x32xf32>
    tpu.vector_store %arg12[%c0_79, %c0_80], %207 {strides = array<i32>} : memref<8x32xf32, #tpu.memory_space<vmem>>, vector<8x32xf32>,
    %cst_81 = arith.constant 0.000000e+00 : f32
    %209 = vector.broadcast %cst_81 : f32 to vector<8x32xf32>
    %210 = vector.shape_cast %200 : vector<8x1xi1> to vector<8x1xi1>
    %211 = vector.broadcast %210 : vector<8x1xi1> to vector<8x32xi1>
    %212 = arith.select %211, %198, %209 : vector<8x32xi1>, vector<8x32xf32>
    %213 = arith.index_cast %166 : i32 to index
    %c0_82 = arith.constant 0 : index
    %214 = vector.load %arg10[%213, %c0_82] : memref<64x32xf32, #tpu.memory_space<vmem>>, vector<8x32xf32>
    tpu.vector_store %arg10[%213, %c0_82], %212 {strides = array<i32>} : memref<64x32xf32, #tpu.memory_space<vmem>>, vector<8x32xf32>,
    %c4_i32 = arith.constant 4 : i32
    %c8_i32_83 = arith.constant 8 : i32
    %215 = arith.muli %c4_i32, %c8_i32_83 : i32
    %216 = tpu.assume_multiple %215, 8 : i32
    %c0_84 = arith.constant 0 : index
    %c0_85 = arith.constant 0 : index
    %217 = vector.load %arg11[%c0_84, %c0_85] : memref<8x32xf32, #tpu.memory_space<vmem>>, vector<8x32xf32>
    %c0_86 = arith.constant 0 : index
    %c0_87 = arith.constant 0 : index
    %218 = vector.load %arg12[%c0_86, %c0_87] : memref<8x32xf32, #tpu.memory_space<vmem>>, vector<8x32xf32>
    %219 = arith.index_cast %216 : i32 to index
    %c0_88 = arith.constant 0 : index
    %220 = vector.load %arg9[%219, %c0_88] : memref<64x128xf32, #tpu.memory_space<vmem>>, vector<8x128xf32>
    %221 = arith.truncf %217 : vector<8x32xf32> to vector<8x32xbf16>
    %cst_89 = arith.constant dense<0.000000e+00> : vector<8x128xf32>
    %222 = tpu.matmul %221, %14, %cst_89 {dimension_numbers = #tpu.dot_dimension_numbers<[1], [0], [0], [1], [0, 0, 1, 1], [], []>} : vector<8x32xbf16>, vector<32x128xbf16>, vector<8x128xf32> -> vector<8x128xf32>
    %223 = arith.addf %220, %222 : vector<8x128xf32>
    %224 = vector.extract_strided_slice %223 {offsets = [0, 0], sizes = [8, 32], strides = [1, 1]} : vector<8x128xf32> to vector<8x32xf32>
    %225 = arith.negf %224 : vector<8x32xf32>
    %226 = math.exp %225 : vector<8x32xf32>
    %cst_90 = arith.constant 1.000000e+00 : f32
    %227 = vector.broadcast %cst_90 : f32 to vector<8x32xf32>
    %228 = arith.addf %227, %226 : vector<8x32xf32>
    %229 = arith.divf %227, %228 : vector<8x32xf32>
    %230 = vector.extract_strided_slice %223 {offsets = [0, 32], sizes = [8, 32], strides = [1, 1]} : vector<8x128xf32> to vector<8x32xf32>
    %231 = arith.negf %230 : vector<8x32xf32>
    %232 = math.exp %231 : vector<8x32xf32>
    %cst_91 = arith.constant 1.000000e+00 : f32
    %233 = vector.broadcast %cst_91 : f32 to vector<8x32xf32>
    %234 = arith.addf %233, %232 : vector<8x32xf32>
    %235 = arith.divf %233, %234 : vector<8x32xf32>
    %236 = vector.extract_strided_slice %223 {offsets = [0, 64], sizes = [8, 32], strides = [1, 1]} : vector<8x128xf32> to vector<8x32xf32>
    %237 = math.tanh %236 : vector<8x32xf32>
    %238 = vector.extract_strided_slice %223 {offsets = [0, 96], sizes = [8, 32], strides = [1, 1]} : vector<8x128xf32> to vector<8x32xf32>
    %239 = arith.negf %238 : vector<8x32xf32>
    %240 = math.exp %239 : vector<8x32xf32>
    %cst_92 = arith.constant 1.000000e+00 : f32
    %241 = vector.broadcast %cst_92 : f32 to vector<8x32xf32>
    %242 = arith.addf %241, %240 : vector<8x32xf32>
    %243 = arith.divf %241, %242 : vector<8x32xf32>
    %244 = arith.mulf %235, %218 : vector<8x32xf32>
    %245 = arith.mulf %229, %237 : vector<8x32xf32>
    %246 = arith.addf %244, %245 : vector<8x32xf32>
    %247 = math.tanh %246 : vector<8x32xf32>
    %248 = arith.mulf %243, %247 : vector<8x32xf32>
    %249 = vector.broadcast %c4_i32 : i32 to vector<8x1xi32>
    %250 = arith.cmpi sgt, %13, %249 : vector<8x1xi32>
    %251 = vector.shape_cast %250 : vector<8x1xi1> to vector<8x1xi1>
    %252 = vector.broadcast %251 : vector<8x1xi1> to vector<8x32xi1>
    %253 = arith.select %252, %248, %217 : vector<8x32xi1>, vector<8x32xf32>
    %c0_93 = arith.constant 0 : index
    %c0_94 = arith.constant 0 : index
    %254 = vector.load %arg11[%c0_93, %c0_94] : memref<8x32xf32, #tpu.memory_space<vmem>>, vector<8x32xf32>
    tpu.vector_store %arg11[%c0_93, %c0_94], %253 {strides = array<i32>} : memref<8x32xf32, #tpu.memory_space<vmem>>, vector<8x32xf32>,
    %255 = vector.shape_cast %250 : vector<8x1xi1> to vector<8x1xi1>
    %256 = vector.broadcast %255 : vector<8x1xi1> to vector<8x32xi1>
    %257 = arith.select %256, %246, %218 : vector<8x32xi1>, vector<8x32xf32>
    %c0_95 = arith.constant 0 : index
    %c0_96 = arith.constant 0 : index
    %258 = vector.load %arg12[%c0_95, %c0_96] : memref<8x32xf32, #tpu.memory_space<vmem>>, vector<8x32xf32>
    tpu.vector_store %arg12[%c0_95, %c0_96], %257 {strides = array<i32>} : memref<8x32xf32, #tpu.memory_space<vmem>>, vector<8x32xf32>,
    %cst_97 = arith.constant 0.000000e+00 : f32
    %259 = vector.broadcast %cst_97 : f32 to vector<8x32xf32>
    %260 = vector.shape_cast %250 : vector<8x1xi1> to vector<8x1xi1>
    %261 = vector.broadcast %260 : vector<8x1xi1> to vector<8x32xi1>
    %262 = arith.select %261, %248, %259 : vector<8x32xi1>, vector<8x32xf32>
    %263 = arith.index_cast %216 : i32 to index
    %c0_98 = arith.constant 0 : index
    %264 = vector.load %arg10[%263, %c0_98] : memref<64x32xf32, #tpu.memory_space<vmem>>, vector<8x32xf32>
    tpu.vector_store %arg10[%263, %c0_98], %262 {strides = array<i32>} : memref<64x32xf32, #tpu.memory_space<vmem>>, vector<8x32xf32>,
    %c5_i32 = arith.constant 5 : i32
    %c8_i32_99 = arith.constant 8 : i32
    %265 = arith.muli %c5_i32, %c8_i32_99 : i32
    %266 = tpu.assume_multiple %265, 8 : i32
    %c0_100 = arith.constant 0 : index
    %c0_101 = arith.constant 0 : index
    %267 = vector.load %arg11[%c0_100, %c0_101] : memref<8x32xf32, #tpu.memory_space<vmem>>, vector<8x32xf32>
    %c0_102 = arith.constant 0 : index
    %c0_103 = arith.constant 0 : index
    %268 = vector.load %arg12[%c0_102, %c0_103] : memref<8x32xf32, #tpu.memory_space<vmem>>, vector<8x32xf32>
    %269 = arith.index_cast %266 : i32 to index
    %c0_104 = arith.constant 0 : index
    %270 = vector.load %arg9[%269, %c0_104] : memref<64x128xf32, #tpu.memory_space<vmem>>, vector<8x128xf32>
    %271 = arith.truncf %267 : vector<8x32xf32> to vector<8x32xbf16>
    %cst_105 = arith.constant dense<0.000000e+00> : vector<8x128xf32>
    %272 = tpu.matmul %271, %14, %cst_105 {dimension_numbers = #tpu.dot_dimension_numbers<[1], [0], [0], [1], [0, 0, 1, 1], [], []>} : vector<8x32xbf16>, vector<32x128xbf16>, vector<8x128xf32> -> vector<8x128xf32>
    %273 = arith.addf %270, %272 : vector<8x128xf32>
    %274 = vector.extract_strided_slice %273 {offsets = [0, 0], sizes = [8, 32], strides = [1, 1]} : vector<8x128xf32> to vector<8x32xf32>
    %275 = arith.negf %274 : vector<8x32xf32>
    %276 = math.exp %275 : vector<8x32xf32>
    %cst_106 = arith.constant 1.000000e+00 : f32
    %277 = vector.broadcast %cst_106 : f32 to vector<8x32xf32>
    %278 = arith.addf %277, %276 : vector<8x32xf32>
    %279 = arith.divf %277, %278 : vector<8x32xf32>
    %280 = vector.extract_strided_slice %273 {offsets = [0, 32], sizes = [8, 32], strides = [1, 1]} : vector<8x128xf32> to vector<8x32xf32>
    %281 = arith.negf %280 : vector<8x32xf32>
    %282 = math.exp %281 : vector<8x32xf32>
    %cst_107 = arith.constant 1.000000e+00 : f32
    %283 = vector.broadcast %cst_107 : f32 to vector<8x32xf32>
    %284 = arith.addf %283, %282 : vector<8x32xf32>
    %285 = arith.divf %283, %284 : vector<8x32xf32>
    %286 = vector.extract_strided_slice %273 {offsets = [0, 64], sizes = [8, 32], strides = [1, 1]} : vector<8x128xf32> to vector<8x32xf32>
    %287 = math.tanh %286 : vector<8x32xf32>
    %288 = vector.extract_strided_slice %273 {offsets = [0, 96], sizes = [8, 32], strides = [1, 1]} : vector<8x128xf32> to vector<8x32xf32>
    %289 = arith.negf %288 : vector<8x32xf32>
    %290 = math.exp %289 : vector<8x32xf32>
    %cst_108 = arith.constant 1.000000e+00 : f32
    %291 = vector.broadcast %cst_108 : f32 to vector<8x32xf32>
    %292 = arith.addf %291, %290 : vector<8x32xf32>
    %293 = arith.divf %291, %292 : vector<8x32xf32>
    %294 = arith.mulf %285, %268 : vector<8x32xf32>
    %295 = arith.mulf %279, %287 : vector<8x32xf32>
    %296 = arith.addf %294, %295 : vector<8x32xf32>
    %297 = math.tanh %296 : vector<8x32xf32>
    %298 = arith.mulf %293, %297 : vector<8x32xf32>
    %299 = vector.broadcast %c5_i32 : i32 to vector<8x1xi32>
    %300 = arith.cmpi sgt, %13, %299 : vector<8x1xi32>
    %301 = vector.shape_cast %300 : vector<8x1xi1> to vector<8x1xi1>
    %302 = vector.broadcast %301 : vector<8x1xi1> to vector<8x32xi1>
    %303 = arith.select %302, %298, %267 : vector<8x32xi1>, vector<8x32xf32>
    %c0_109 = arith.constant 0 : index
    %c0_110 = arith.constant 0 : index
    %304 = vector.load %arg11[%c0_109, %c0_110] : memref<8x32xf32, #tpu.memory_space<vmem>>, vector<8x32xf32>
    tpu.vector_store %arg11[%c0_109, %c0_110], %303 {strides = array<i32>} : memref<8x32xf32, #tpu.memory_space<vmem>>, vector<8x32xf32>,
    %305 = vector.shape_cast %300 : vector<8x1xi1> to vector<8x1xi1>
    %306 = vector.broadcast %305 : vector<8x1xi1> to vector<8x32xi1>
    %307 = arith.select %306, %296, %268 : vector<8x32xi1>, vector<8x32xf32>
    %c0_111 = arith.constant 0 : index
    %c0_112 = arith.constant 0 : index
    %308 = vector.load %arg12[%c0_111, %c0_112] : memref<8x32xf32, #tpu.memory_space<vmem>>, vector<8x32xf32>
    tpu.vector_store %arg12[%c0_111, %c0_112], %307 {strides = array<i32>} : memref<8x32xf32, #tpu.memory_space<vmem>>, vector<8x32xf32>,
    %cst_113 = arith.constant 0.000000e+00 : f32
    %309 = vector.broadcast %cst_113 : f32 to vector<8x32xf32>
    %310 = vector.shape_cast %300 : vector<8x1xi1> to vector<8x1xi1>
    %311 = vector.broadcast %310 : vector<8x1xi1> to vector<8x32xi1>
    %312 = arith.select %311, %298, %309 : vector<8x32xi1>, vector<8x32xf32>
    %313 = arith.index_cast %266 : i32 to index
    %c0_114 = arith.constant 0 : index
    %314 = vector.load %arg10[%313, %c0_114] : memref<64x32xf32, #tpu.memory_space<vmem>>, vector<8x32xf32>
    tpu.vector_store %arg10[%313, %c0_114], %312 {strides = array<i32>} : memref<64x32xf32, #tpu.memory_space<vmem>>, vector<8x32xf32>,
    %c6_i32 = arith.constant 6 : i32
    %c8_i32_115 = arith.constant 8 : i32
    %315 = arith.muli %c6_i32, %c8_i32_115 : i32
    %316 = tpu.assume_multiple %315, 8 : i32
    %c0_116 = arith.constant 0 : index
    %c0_117 = arith.constant 0 : index
    %317 = vector.load %arg11[%c0_116, %c0_117] : memref<8x32xf32, #tpu.memory_space<vmem>>, vector<8x32xf32>
    %c0_118 = arith.constant 0 : index
    %c0_119 = arith.constant 0 : index
    %318 = vector.load %arg12[%c0_118, %c0_119] : memref<8x32xf32, #tpu.memory_space<vmem>>, vector<8x32xf32>
    %319 = arith.index_cast %316 : i32 to index
    %c0_120 = arith.constant 0 : index
    %320 = vector.load %arg9[%319, %c0_120] : memref<64x128xf32, #tpu.memory_space<vmem>>, vector<8x128xf32>
    %321 = arith.truncf %317 : vector<8x32xf32> to vector<8x32xbf16>
    %cst_121 = arith.constant dense<0.000000e+00> : vector<8x128xf32>
    %322 = tpu.matmul %321, %14, %cst_121 {dimension_numbers = #tpu.dot_dimension_numbers<[1], [0], [0], [1], [0, 0, 1, 1], [], []>} : vector<8x32xbf16>, vector<32x128xbf16>, vector<8x128xf32> -> vector<8x128xf32>
    %323 = arith.addf %320, %322 : vector<8x128xf32>
    %324 = vector.extract_strided_slice %323 {offsets = [0, 0], sizes = [8, 32], strides = [1, 1]} : vector<8x128xf32> to vector<8x32xf32>
    %325 = arith.negf %324 : vector<8x32xf32>
    %326 = math.exp %325 : vector<8x32xf32>
    %cst_122 = arith.constant 1.000000e+00 : f32
    %327 = vector.broadcast %cst_122 : f32 to vector<8x32xf32>
    %328 = arith.addf %327, %326 : vector<8x32xf32>
    %329 = arith.divf %327, %328 : vector<8x32xf32>
    %330 = vector.extract_strided_slice %323 {offsets = [0, 32], sizes = [8, 32], strides = [1, 1]} : vector<8x128xf32> to vector<8x32xf32>
    %331 = arith.negf %330 : vector<8x32xf32>
    %332 = math.exp %331 : vector<8x32xf32>
    %cst_123 = arith.constant 1.000000e+00 : f32
    %333 = vector.broadcast %cst_123 : f32 to vector<8x32xf32>
    %334 = arith.addf %333, %332 : vector<8x32xf32>
    %335 = arith.divf %333, %334 : vector<8x32xf32>
    %336 = vector.extract_strided_slice %323 {offsets = [0, 64], sizes = [8, 32], strides = [1, 1]} : vector<8x128xf32> to vector<8x32xf32>
    %337 = math.tanh %336 : vector<8x32xf32>
    %338 = vector.extract_strided_slice %323 {offsets = [0, 96], sizes = [8, 32], strides = [1, 1]} : vector<8x128xf32> to vector<8x32xf32>
    %339 = arith.negf %338 : vector<8x32xf32>
    %340 = math.exp %339 : vector<8x32xf32>
    %cst_124 = arith.constant 1.000000e+00 : f32
    %341 = vector.broadcast %cst_124 : f32 to vector<8x32xf32>
    %342 = arith.addf %341, %340 : vector<8x32xf32>
    %343 = arith.divf %341, %342 : vector<8x32xf32>
    %344 = arith.mulf %335, %318 : vector<8x32xf32>
    %345 = arith.mulf %329, %337 : vector<8x32xf32>
    %346 = arith.addf %344, %345 : vector<8x32xf32>
    %347 = math.tanh %346 : vector<8x32xf32>
    %348 = arith.mulf %343, %347 : vector<8x32xf32>
    %349 = vector.broadcast %c6_i32 : i32 to vector<8x1xi32>
    %350 = arith.cmpi sgt, %13, %349 : vector<8x1xi32>
    %351 = vector.shape_cast %350 : vector<8x1xi1> to vector<8x1xi1>
    %352 = vector.broadcast %351 : vector<8x1xi1> to vector<8x32xi1>
    %353 = arith.select %352, %348, %317 : vector<8x32xi1>, vector<8x32xf32>
    %c0_125 = arith.constant 0 : index
    %c0_126 = arith.constant 0 : index
    %354 = vector.load %arg11[%c0_125, %c0_126] : memref<8x32xf32, #tpu.memory_space<vmem>>, vector<8x32xf32>
    tpu.vector_store %arg11[%c0_125, %c0_126], %353 {strides = array<i32>} : memref<8x32xf32, #tpu.memory_space<vmem>>, vector<8x32xf32>,
    %355 = vector.shape_cast %350 : vector<8x1xi1> to vector<8x1xi1>
    %356 = vector.broadcast %355 : vector<8x1xi1> to vector<8x32xi1>
    %357 = arith.select %356, %346, %318 : vector<8x32xi1>, vector<8x32xf32>
    %c0_127 = arith.constant 0 : index
    %c0_128 = arith.constant 0 : index
    %358 = vector.load %arg12[%c0_127, %c0_128] : memref<8x32xf32, #tpu.memory_space<vmem>>, vector<8x32xf32>
    tpu.vector_store %arg12[%c0_127, %c0_128], %357 {strides = array<i32>} : memref<8x32xf32, #tpu.memory_space<vmem>>, vector<8x32xf32>,
    %cst_129 = arith.constant 0.000000e+00 : f32
    %359 = vector.broadcast %cst_129 : f32 to vector<8x32xf32>
    %360 = vector.shape_cast %350 : vector<8x1xi1> to vector<8x1xi1>
    %361 = vector.broadcast %360 : vector<8x1xi1> to vector<8x32xi1>
    %362 = arith.select %361, %348, %359 : vector<8x32xi1>, vector<8x32xf32>
    %363 = arith.index_cast %316 : i32 to index
    %c0_130 = arith.constant 0 : index
    %364 = vector.load %arg10[%363, %c0_130] : memref<64x32xf32, #tpu.memory_space<vmem>>, vector<8x32xf32>
    tpu.vector_store %arg10[%363, %c0_130], %362 {strides = array<i32>} : memref<64x32xf32, #tpu.memory_space<vmem>>, vector<8x32xf32>,
    %c7_i32 = arith.constant 7 : i32
    %c8_i32_131 = arith.constant 8 : i32
    %365 = arith.muli %c7_i32, %c8_i32_131 : i32
    %366 = tpu.assume_multiple %365, 8 : i32
    %c0_132 = arith.constant 0 : index
    %c0_133 = arith.constant 0 : index
    %367 = vector.load %arg11[%c0_132, %c0_133] : memref<8x32xf32, #tpu.memory_space<vmem>>, vector<8x32xf32>
    %c0_134 = arith.constant 0 : index
    %c0_135 = arith.constant 0 : index
    %368 = vector.load %arg12[%c0_134, %c0_135] : memref<8x32xf32, #tpu.memory_space<vmem>>, vector<8x32xf32>
    %369 = arith.index_cast %366 : i32 to index
    %c0_136 = arith.constant 0 : index
    %370 = vector.load %arg9[%369, %c0_136] : memref<64x128xf32, #tpu.memory_space<vmem>>, vector<8x128xf32>
    %371 = arith.truncf %367 : vector<8x32xf32> to vector<8x32xbf16>
    %cst_137 = arith.constant dense<0.000000e+00> : vector<8x128xf32>
    %372 = tpu.matmul %371, %14, %cst_137 {dimension_numbers = #tpu.dot_dimension_numbers<[1], [0], [0], [1], [0, 0, 1, 1], [], []>} : vector<8x32xbf16>, vector<32x128xbf16>, vector<8x128xf32> -> vector<8x128xf32>
    %373 = arith.addf %370, %372 : vector<8x128xf32>
    %374 = vector.extract_strided_slice %373 {offsets = [0, 0], sizes = [8, 32], strides = [1, 1]} : vector<8x128xf32> to vector<8x32xf32>
    %375 = arith.negf %374 : vector<8x32xf32>
    %376 = math.exp %375 : vector<8x32xf32>
    %cst_138 = arith.constant 1.000000e+00 : f32
    %377 = vector.broadcast %cst_138 : f32 to vector<8x32xf32>
    %378 = arith.addf %377, %376 : vector<8x32xf32>
    %379 = arith.divf %377, %378 : vector<8x32xf32>
    %380 = vector.extract_strided_slice %373 {offsets = [0, 32], sizes = [8, 32], strides = [1, 1]} : vector<8x128xf32> to vector<8x32xf32>
    %381 = arith.negf %380 : vector<8x32xf32>
    %382 = math.exp %381 : vector<8x32xf32>
    %cst_139 = arith.constant 1.000000e+00 : f32
    %383 = vector.broadcast %cst_139 : f32 to vector<8x32xf32>
    %384 = arith.addf %383, %382 : vector<8x32xf32>
    %385 = arith.divf %383, %384 : vector<8x32xf32>
    %386 = vector.extract_strided_slice %373 {offsets = [0, 64], sizes = [8, 32], strides = [1, 1]} : vector<8x128xf32> to vector<8x32xf32>
    %387 = math.tanh %386 : vector<8x32xf32>
    %388 = vector.extract_strided_slice %373 {offsets = [0, 96], sizes = [8, 32], strides = [1, 1]} : vector<8x128xf32> to vector<8x32xf32>
    %389 = arith.negf %388 : vector<8x32xf32>
    %390 = math.exp %389 : vector<8x32xf32>
    %cst_140 = arith.constant 1.000000e+00 : f32
    %391 = vector.broadcast %cst_140 : f32 to vector<8x32xf32>
    %392 = arith.addf %391, %390 : vector<8x32xf32>
    %393 = arith.divf %391, %392 : vector<8x32xf32>
    %394 = arith.mulf %385, %368 : vector<8x32xf32>
    %395 = arith.mulf %379, %387 : vector<8x32xf32>
    %396 = arith.addf %394, %395 : vector<8x32xf32>
    %397 = math.tanh %396 : vector<8x32xf32>
    %398 = arith.mulf %393, %397 : vector<8x32xf32>
    %399 = vector.broadcast %c7_i32 : i32 to vector<8x1xi32>
    %400 = arith.cmpi sgt, %13, %399 : vector<8x1xi32>
    %401 = vector.shape_cast %400 : vector<8x1xi1> to vector<8x1xi1>
    %402 = vector.broadcast %401 : vector<8x1xi1> to vector<8x32xi1>
    %403 = arith.select %402, %398, %367 : vector<8x32xi1>, vector<8x32xf32>
    %c0_141 = arith.constant 0 : index
    %c0_142 = arith.constant 0 : index
    %404 = vector.load %arg11[%c0_141, %c0_142] : memref<8x32xf32, #tpu.memory_space<vmem>>, vector<8x32xf32>
    tpu.vector_store %arg11[%c0_141, %c0_142], %403 {strides = array<i32>} : memref<8x32xf32, #tpu.memory_space<vmem>>, vector<8x32xf32>,
    %405 = vector.shape_cast %400 : vector<8x1xi1> to vector<8x1xi1>
    %406 = vector.broadcast %405 : vector<8x1xi1> to vector<8x32xi1>
    %407 = arith.select %406, %396, %368 : vector<8x32xi1>, vector<8x32xf32>
    %c0_143 = arith.constant 0 : index
    %c0_144 = arith.constant 0 : index
    %408 = vector.load %arg12[%c0_143, %c0_144] : memref<8x32xf32, #tpu.memory_space<vmem>>, vector<8x32xf32>
    tpu.vector_store %arg12[%c0_143, %c0_144], %407 {strides = array<i32>} : memref<8x32xf32, #tpu.memory_space<vmem>>, vector<8x32xf32>,
    %cst_145 = arith.constant 0.000000e+00 : f32
    %409 = vector.broadcast %cst_145 : f32 to vector<8x32xf32>
    %410 = vector.shape_cast %400 : vector<8x1xi1> to vector<8x1xi1>
    %411 = vector.broadcast %410 : vector<8x1xi1> to vector<8x32xi1>
    %412 = arith.select %411, %398, %409 : vector<8x32xi1>, vector<8x32xf32>
    %413 = arith.index_cast %366 : i32 to index
    %c0_146 = arith.constant 0 : index
    %414 = vector.load %arg10[%413, %c0_146] : memref<64x32xf32, #tpu.memory_space<vmem>>, vector<8x32xf32>
    tpu.vector_store %arg10[%413, %c0_146], %412 {strides = array<i32>} : memref<64x32xf32, #tpu.memory_space<vmem>>, vector<8x32xf32>,
    %c8_i32_147 = arith.constant 8 : i32
    %c0_148 = arith.constant 0 : index
    %c0_149 = arith.constant 0 : index
    %415 = vector.load %arg10[%c0_148, %c0_149] : memref<64x32xf32, #tpu.memory_space<vmem>>, vector<64x32xf32>
    %c0_150 = arith.constant 0 : index
    %c0_151 = arith.constant 0 : index
    %416 = vector.load %arg6[%c0_150, %c0_151] : memref<32x128xf32, #tpu.memory_space<vmem>>, vector<32x128xf32>
    %cst_152 = arith.constant dense<0.000000e+00> : vector<64x128xf32>
    %417 = tpu.matmul %415, %416, %cst_152 {dimension_numbers = #tpu.dot_dimension_numbers<[1], [0], [0], [1], [0, 0, 1, 1], [], []>} : vector<64x32xf32>, vector<32x128xf32>, vector<64x128xf32> -> vector<64x128xf32>
    %c0_153 = arith.constant 0 : index
    %c0_154 = arith.constant 0 : index
    %418 = vector.load %arg7[%c0_153, %c0_154] : memref<1x128xf32, #tpu.memory_space<vmem>>, vector<1x128xf32>
    %419 = vector.broadcast %418 : vector<1x128xf32> to vector<64x128xf32>
    %420 = arith.addf %417, %419 : vector<64x128xf32>
    %cst_155 = arith.constant dense<0xFF800000> : vector<64xf32>
    %421 = vector.multi_reduction <maximumf>, %420, %cst_155 [1] : vector<64x128xf32> to vector<64xf32>
    %422 = vector.shape_cast %421 : vector<64xf32> to vector<64x1xf32>
    %423 = vector.broadcast %422 : vector<64x1xf32> to vector<64x128xf32>
    %424 = arith.subf %420, %423 : vector<64x128xf32>
    %425 = math.exp %424 : vector<64x128xf32>
    %cst_156 = arith.constant dense<0.000000e+00> : vector<64xf32>
    %426 = vector.multi_reduction <add>, %425, %cst_156 [1] : vector<64x128xf32> to vector<64xf32>
    %427 = vector.shape_cast %426 : vector<64xf32> to vector<64x1xf32>
    %428 = math.log %427 : vector<64x1xf32>
    %429 = vector.broadcast %428 : vector<64x1xf32> to vector<64x128xf32>
    %430 = arith.subf %424, %429 : vector<64x128xf32>
    %c0_157 = arith.constant 0 : index
    %c0_158 = arith.constant 0 : index
    %431 = vector.load %arg8[%c0_157, %c0_158] : memref<64x128xf32, #tpu.memory_space<vmem>>, vector<64x128xf32>
    tpu.vector_store %arg8[%c0_157, %c0_158], %430 {strides = array<i32>} : memref<64x128xf32, #tpu.memory_space<vmem>>, vector<64x128xf32>,
    return
  }
  func.func @transform_0(%arg0: i32) -> (i32, i32) {
    %c0_i32 = arith.constant 0 : i32
    %c0_i32_0 = arith.constant 0 : i32
    %c0_i32_1 = arith.constant 0 : i32
    return %c0_i32, %c0_i32_0 : i32, i32
  }
  func.func @transform_1(%arg0: i32) -> (i32, i32) {
    %c0_i32 = arith.constant 0 : i32
    %c0_i32_0 = arith.constant 0 : i32
    %c0_i32_1 = arith.constant 0 : i32
    return %c0_i32, %c0_i32_0 : i32, i32
  }
  func.func @transform_2(%arg0: i32) -> (i32, i32) {
    %c0_i32 = arith.constant 0 : i32
    %c0_i32_0 = arith.constant 0 : i32
    %c0_i32_1 = arith.constant 0 : i32
    return %c0_i32, %c0_i32_0 : i32, i32
  }
  func.func @transform_3(%arg0: i32) -> (i32, i32) {
    %c0_i32 = arith.constant 0 : i32
    %c0_i32_0 = arith.constant 0 : i32
    %c0_i32_1 = arith.constant 0 : i32
    return %c0_i32, %c0_i32_0 : i32, i32
  }
  func.func @transform_4(%arg0: i32) -> (i32, i32) {
    %c0_i32 = arith.constant 0 : i32
    %c0_i32_0 = arith.constant 0 : i32
    %c0_i32_1 = arith.constant 0 : i32
    return %c0_i32, %c0_i32_0 : i32, i32
  }
  func.func @transform_5(%arg0: i32) -> (i32, i32) {
    %c0_i32 = arith.constant 0 : i32
    %c0_i32_0 = arith.constant 0 : i32
    %c0_i32_1 = arith.constant 0 : i32
    return %c0_i32, %c0_i32_0 : i32, i32
  }
  func.func @transform_6(%arg0: i32) -> (i32, i32) {
    %c0_i32 = arith.constant 0 : i32
    %c0_i32_0 = arith.constant 0 : i32
    %c0_i32_1 = arith.constant 0 : i32
    return %c0_i32, %c0_i32_0 : i32, i32
  }
  func.func @transform_7(%arg0: i32) -> (i32, i32) {
    %c0_i32 = arith.constant 0 : i32
    %c0_i32_0 = arith.constant 0 : i32
    %c0_i32_1 = arith.constant 0 : i32
    return %c0_i32, %c0_i32_0 : i32, i32
  }
}

</mosaic_0001>

<bundles_post_ra>
// kernel: forward.1
= control target key start
LH: loop header
LB: loop body
LE: loop exit
PB: predicated region body
PF: predicated region fallthrough
CT: control target
= control target key end

     0   :  { %vm156_vm0 = vcmask 261120   ;;  %vm70_vm1 = vcmask 130048   ;;  %v1563_v1 = vmov 0.0   ;;  %vm1564_vm2 = vmmov 0   ;;  %s1567_s14 = smov 32   ;;  %s1568_s17 = smov 96   ;;  %s2040_s2 = inlined_call_operand.vmem [shape: bf16[16,128], index: 2, kind: input, shape index: {}]   ;;  %s2041_s1 = inlined_call_operand.vmem [shape: bf16[64,16], index: 1, kind: input, shape index: {}]   ;;  %s2042_s3 = inlined_call_operand.vmem [shape: bf16[32,128], index: 3, kind: input, shape index: {}]   ;;  %s2043_s4 = inlined_call_operand.vmem [shape: f32[1,128], index: 4, kind: input, shape index: {}]   ;;  %s2044_s0 = inlined_call_operand.vmem [shape: s32[8,1], index: 0, kind: input, shape index: {}]   ;;  %s2045_s5 = inlined_call_operand.vmem [shape: f32[32,128], index: 5, kind: input, shape index: {}]   ;;  %s2046_s6 = inlined_call_operand.vmem [shape: f32[1,128], index: 6, kind: input, shape index: {}]   ;;  %s2047_s7 = inlined_call_operand.vmem [shape: f32[64,128], index: 7, kind: output, shape index: {}]  }
   0x1   :  { %v1460_v0 = vld [vmem:[%s2040_s2] sm:$0xff]   ;;  %157 = vst.msk [vmem:[#allocation4] sm:$0xff] %vm156_vm0, %v1563_v1  ;;  %158 = vst.msk [vmem:[#allocation5] sm:$0xff] %vm156_vm0, %v1563_v1  ;;  %v1461_v2 = vld [vmem:[%s2041_s1 + $0x10] sm:$0xff]   ;;  %v1565_v32 = vmov 0  }
   0x2   :  { %159 = vst.msk [vmem:[#allocation3] sm:$0xff] %vm156_vm0, %v1563_v1  ;;  %160 = vst.msk [vmem:[#allocation3 + $0x8] sm:$0xff] %vm156_vm0, %v1563_v1  ;;  %1450 = vmatprep.subr.bf16.mxu1 %v1460_v0  ;;  %1348 = vmatprep.subr.bf16.mxu0 %v1460_v0  ;;  %v1462_v3 = vld [vmem:[%s2041_s1 + $0x18] sm:$0xff]   ;;  %v1642_v4 = vld [vmem:[%s2042_s3] sm:$0xff]  }
   0x3   :  { %161 = vst.msk [vmem:[#allocation3 + $0x10] sm:$0xff] %vm156_vm0, %v1563_v1  ;;  %162 = vst.msk [vmem:[#allocation3 + $0x18] sm:$0xff] %vm156_vm0, %v1563_v1  ;;  %1451 = vmatpush3.bf16.msra.mxu1 %v1460_v0  ;;  %1354 = vmatprep.mubr.msk.bf16.mxu1 %vm70_vm1, %v1461_v2  ;;  %v1464_v5 = vld [vmem:[%s2041_s1] sm:$0xff]   ;;  %v1465_v6 = vld [vmem:[%s2041_s1 + $0x8] sm:$0xff]  }
   0x4   :  { %163 = vst.msk [vmem:[#allocation3 + $0x20] sm:$0xff] %vm156_vm0, %v1563_v1  ;;  %164 = vst.msk [vmem:[#allocation3 + $0x28] sm:$0xff] %vm156_vm0, %v1563_v1  ;;  %1349 = vmatpush3.bf16.msra.mxu0 %v1460_v0  ;;  %1358 = vmatprep.subr.bf16.mxu1 %v1563_v1  ;;  %v1659_v7 = vld [vmem:[%s2042_s3 + $0x8] sm:$0xff]   ;;  %v1270_v10 = vld [vmem:[%s2043_s4] ss:$0 sm:$0xff]  ;;  %s1566_s4 = smov 64  }
   0x5   :  { %165 = vst.msk [vmem:[#allocation3 + $0x30] sm:$0xff] %vm156_vm0, %v1563_v1  ;;  %166 = vst.msk [vmem:[#allocation3 + $0x38] sm:$0xff] %vm156_vm0, %v1563_v1  ;;  %1374 = vmatprep.subr.bf16.mxu0 %v1563_v1  ;;  %1350 = vmatprep.mubr.msk.bf16.mxu0 %vm70_vm1, %v1464_v5  ;;  %v1707_v38 = vld [vmem:[%s2044_s0] sm:$0xff] }
   0x6   :  { %1355 = vmatmul.mubr.msk.bf16.vlgmr.msra.gmra.mrb[0].mxu1 %vm70_vm1, %v1462_v3  ;;  %1458 = vset.pattern.permute.xlu1 %v1565_v32  ;;  %vm260_vm3 = vcmp.gt.s32.totalorder %v1707_v38, 0  ;;  %vm365_vm5 = vcmp.gt.s32.totalorder %v1707_v38, 1  ;;  %vm471_vm7 = vcmp.gt.s32.totalorder %v1707_v38, 2  ;;  %vm577_vm9 = vcmp.gt.s32.totalorder %v1707_v38, 3 }
   0x7   :  { %1359 = vmatpush3.bf16.msra.mxu1 %v1642_v4  ;;  %1351 = vmatmul.mubr.msk.bf16.vlgmr.msra.gmra.mrb[0].mxu0 %vm70_vm1, %v1465_v6  ;;  %v261_v42 = vsel %vm260_vm3, 1, %v1565_v32  ;;  %v366_v56 = vsel %vm365_vm5, 1, %v1565_v32  ;;  %vm683_vm11 = vcmp.gt.s32.totalorder %v1707_v38, 4  ;;  %vm789_vm13 = vcmp.gt.s32.totalorder %v1707_v38, 5 }
   0x8   :  { %v1661_v8 = vld [vmem:[#allocation4] sm:$0xff]  ;;  %1360 = vmatprep.subr.bf16.mxu1 %v1563_v1  ;;  %1362 = vmatprep.mubr.msk.bf16.mxu1 %vm1564_vm2, %v1563_v1  ;;  %v173_v34 = vld [vmem:[#allocation5] sm:$0xff]  ;;  %vm895_vm15 = vcmp.gt.s32.totalorder %v1707_v38, 6 }
   0x9   :  { %1375 = vmatpush3.bf16.msra.mxu0 %v1642_v4  ;;  %1378 = vmatprep.mubr.msk.bf16.mxu0 %vm1564_vm2, %v1563_v1  ;;  %v175_v9 = vpack.c.bf16 %v1661_v8, %v1661_v8 }
   0xa   :  { %1376 = vmatprep.subr.bf16.mxu0 %v1563_v1  ;;  %1459 = vset.pattern.permute.xlu0 %v1565_v32 }
   0xb   :  { %1361 = vmatpush3.bf16.msra.mxu1 %v1659_v7 }
   0xc   :  { %1366 = vmatprep.subr.bf16.mxu1 %v1563_v1 }
   0xd   :  { %1377 = vmatpush3.bf16.msra.mxu0 %v1659_v7 }
   0xe   :  { %1363 = vmatmul.mubr.msk.bf16.vlgmr.msra.gmra.mrb[4].mxu1 %vm156_vm0, %v175_v9  ;;  %1390 = vmatprep.subr.bf16.mxu0 %v1563_v1 }
   0xf   :  { %1367 = vmatpush3.bf16.msra.mxu1 %v1642_v4  ;;  %1370 = vmatprep.mubr.msk.bf16.mxu1 %vm1564_vm2, %v1563_v1 }
  0x10   :  { %1368 = vmatprep.subr.bf16.mxu1 %v1563_v1 }
  0x13   :  { %1369 = vmatpush3.bf16.msra.mxu1 %v1659_v7 }
  0x14   :  { %1382 = vmatprep.subr.bf16.mxu1 %v1563_v1 }
  0xd9   :  { %v1356_v11 = vpop.f32.mrb[0].mxu1 }
  0xda   :  { %v1686_v12 = vadd.f32 %v1356_v11, %v1270_v10  ;;  %v133_v13 = vpop.f32.mrb[1].mxu1  ;;  %v1352_v14 = vpop.f32.mrb[0].mxu0 }
  0xdb   :  { %v1688_v15 = vadd.f32 %v1270_v10, %v133_v13  ;;  %v1357_v16 = vpop.f32.mrb[2].mxu1  ;;  %v1690_v17 = vadd.f32 %v1352_v14, %v1270_v10  ;;  %v117_v18 = vpop.f32.mrb[1].mxu0 }
  0xdc   :  { %v1692_v19 = vadd.f32 %v1357_v16, %v1270_v10  ;;  %v136_v20 = vpop.f32.mrb[3].mxu1  ;;  %v1353_v21 = vpop.f32.mrb[2].mxu0  ;;  %v118_v25 = vadd.f32 %v1270_v10, %v117_v18 }
  0xdd   :  { %v1694_v22 = vadd.f32 %v1270_v10, %v136_v20  ;;  %v1696_v23 = vadd.f32 %v1353_v21, %v1270_v10  ;;  %v120_v24 = vpop.f32.mrb[3].mxu0 }
  0xde   :  { %v1698_v26 = vadd.f32 %v1270_v10, %v120_v24 }
  0xe1   :  { %v225_v27 = vpop.f32.mrb[4].mxu1 }
  0xe2   :  { %v231_v28 = vadd.f32 %v225_v27, %v118_v25  ;;  %v1364_v29 = vpop.f32.mrb[5].mxu1 }
  0xe3   :  { %v228_v30 = vpop.f32.mrb[6].mxu1 }
  0xe4   :  { %1467 = vtanh.f32 %v231_v28  ;;  %v1365_v31 = vpop.f32.mrb[7].mxu1  ;;  %v1283_v35 = vmul.f32 -1.442695, %v231_v28  ;;  %v472_v28 = vsel %vm471_vm7, 1, %v1565_v32 }
  0xe6   :  { %1469 = vpow2.f32 %v1283_v35 }
  0xee   :  { %v1468_v33 = vpop.eup %1467 }
  0xef   :  { %245 = vrot.lane.b32.xlu0 %v1468_v33, %s1566_s4 }
  0xf0   :  { %v1470_v36 = vpop.eup %1469 }
  0xf1   :  { %v235_v37 = vadd.f32 1.0, %v1470_v36 }
  0xf3   :  { %240 = vrot.lane.b32.xlu0 %v173_v34, %s1567_s14  ;;  %1471 = vrcp.f32 %v235_v37 }
  0xfd   :  { %v1472_v39 = vpop.eup %1471 }
 0x161   :  { %v246_v40 = vpop.permute.xlu0 %245 }
 0x162   :  { %v248_v41 = vmul.f32 %v1472_v39, %v246_v40 }
 0x164   :  { %250 = vrot.lane.b32.xlu1 %v248_v41, %s1567_s14 }
 0x165   :  { %v241_v43 = vpop.permute.xlu0 %240 }
 0x166   :  { %v243_v44 = vmul.f32 %v1472_v39, %v241_v43 }
 0x168   :  { %263 = vperm.xlu1 %1458, %v261_v42  }
 0x16c   :  { %267 = vrot.lane.b32.xlu1 %v1661_v8, %s1568_s17 }
 0x1d6   :  { %v251_v45 = vpop.permute.xlu1 %250 }
 0x1d7   :  { %v253_v46 = vadd.f32 %v251_v45, %v243_v44 }
 0x1d9   :  { %1473 = vtanh.f32 %v253_v46 }
 0x1e3   :  { %v1474_v47 = vpop.eup %1473 }
 0x1e4   :  { %256 = vrot.lane.b32.xlu0 %v1474_v47, %s1566_s4 }
 0x1e7   :  { %v1715_v48 = vpop.permute.xlu1 %263 }
 0x1e8   :  { %vm265_vm4 = vcmp.eq.s32.totalorder %v1715_v48, 1 }
 0x1e9   :  { %v276_v49 = vsel %vm265_vm4, %v253_v46, %v241_v43 }
 0x1ea   :  { %278 = vrot.lane.b32.xlu1 %v276_v49, %s1568_s17 }
 0x1eb   :  { %v268_v51 = vpop.permute.xlu1 %267 }
 0x256   :  { %v257_v50 = vpop.permute.xlu0 %256 }
 0x257   :  { %v1721_v52 = vmul.f32 %v1472_v39, %v257_v50 }
 0x259   :  { %v270_v53 = vsel %vm265_vm4, %v1721_v52, %v268_v51 }
 0x25a   :  { %272 = vrot.lane.b32.xlu0 %v270_v53, %s1567_s14 }
 0x25c   :  { %v279_v54 = vpop.permute.xlu1 %278 }
 0x25d   :  { %281 = vst.msk [vmem:[#allocation5] sm:$0xff] %vm156_vm0, %v279_v54 }
 0x264   :  { %v289_v55 = vld [vmem:[#allocation5] sm:$0xff] }
 0x265   :  { %345 = vrot.lane.b32.xlu1 %v289_v55, %s1567_s14 }
 0x269   :  { %368 = vperm.xlu1 %1458, %v366_v56  }
 0x2cc   :  { %v273_v57 = vpop.permute.xlu0 %272 }
 0x2cd   :  { %275 = vst.msk [vmem:[#allocation4] sm:$0xff] %vm156_vm0, %v273_v57 }
 0x2d4   :  { %v288_v58 = vld [vmem:[#allocation4] sm:$0xff] }
 0x2d5   :  { %v292_v59 = vpack.c.bf16 %v288_v58, %v288_v58  ;;  %372 = vrot.lane.b32.xlu1 %v288_v58, %s1568_s17 }
 0x2d7   :  { %1371 = vmatmul.mubr.msk.bf16.vlgmr.msra.gmra.mrb[8].mxu1 %vm156_vm0, %v292_v59  ;;  %v346_v11 = vpop.permute.xlu1 %345 }
 0x2d8   :  { %1383 = vmatpush3.bf16.msra.mxu1 %v1642_v4  ;;  %1386 = vmatprep.mubr.msk.bf16.mxu1 %vm1564_vm2, %v1563_v1 }
 0x2d9   :  { %1384 = vmatprep.subr.bf16.mxu1 %v1563_v1 }
 0x2dc   :  { %1385 = vmatpush3.bf16.msra.mxu1 %v1659_v7 }
 0x2dd   :  { %1398 = vmatprep.subr.bf16.mxu1 %v1563_v1 }
 0x2e8   :  { %v1743_v13 = vpop.permute.xlu1 %368 }
 0x2e9   :  { %vm370_vm6 = vcmp.eq.s32.totalorder %v1743_v13, 1 }
 0x347   :  { %v373_v24 = vpop.permute.xlu1 %372 }
 0x3aa   :  { %v330_v60 = vpop.f32.mrb[8].mxu1 }
 0x3ab   :  { %v336_v61 = vadd.f32 %v330_v60, %v1698_v26  ;;  %v1372_v62 = vpop.f32.mrb[9].mxu1  ;;  %v578_v60 = vsel %vm577_vm9, 1, %v1565_v32 }
 0x3ac   :  { %v333_v63 = vpop.f32.mrb[10].mxu1 }
 0x3ad   :  { %1475 = vtanh.f32 %v336_v61  ;;  %v1373_v0 = vpop.f32.mrb[11].mxu1  ;;  %v1285_v3 = vmul.f32 -1.442695, %v336_v61 }
 0x3af   :  { %1477 = vpow2.f32 %v1285_v3 }
 0x3b7   :  { %v1476_v2 = vpop.eup %1475 }
 0x3b8   :  { %350 = vrot.lane.b32.xlu0 %v1476_v2, %s1566_s4 }
 0x3b9   :  { %v1478_v5 = vpop.eup %1477 }
 0x3ba   :  { %v340_v6 = vadd.f32 1.0, %v1478_v5 }
 0x3bc   :  { %1479 = vrcp.f32 %v340_v6 }
 0x3c6   :  { %v1480_v8 = vpop.eup %1479 }
 0x3c7   :  { %v348_v14 = vmul.f32 %v1480_v8, %v346_v11 }
 0x42a   :  { %v351_v9 = vpop.permute.xlu0 %350 }
 0x42b   :  { %v353_v10 = vmul.f32 %v1480_v8, %v351_v9 }
 0x42d   :  { %355 = vrot.lane.b32.xlu0 %v353_v10, %s1567_s14 }
 0x49f   :  { %v356_v16 = vpop.permute.xlu0 %355 }
 0x4a0   :  { %v358_v18 = vadd.f32 %v356_v16, %v348_v14 }
 0x4a2   :  { %1481 = vtanh.f32 %v358_v18  ;;  %v381_v20 = vsel %vm370_vm6, %v358_v18, %v346_v11 }
 0x4a3   :  { %383 = vrot.lane.b32.xlu1 %v381_v20, %s1568_s17 }
 0x4ac   :  { %v1482_v21 = vpop.eup %1481 }
 0x4ad   :  { %361 = vrot.lane.b32.xlu0 %v1482_v21, %s1566_s4 }
 0x515   :  { %v384_v25 = vpop.permute.xlu1 %383 }
 0x516   :  { %386 = vst.msk [vmem:[#allocation5] sm:$0xff] %vm156_vm0, %v384_v25 }
 0x51d   :  { %v395_v26 = vld [vmem:[#allocation5] sm:$0xff] }
 0x51e   :  { %451 = vrot.lane.b32.xlu1 %v395_v26, %s1567_s14 }
 0x51f   :  { %v362_v27 = vpop.permute.xlu0 %361 }
 0x520   :  { %v1754_v29 = vmul.f32 %v1480_v8, %v362_v27 }
 0x522   :  { %474 = vperm.xlu1 %1458, %v472_v28   ;;  %v375_v30 = vsel %vm370_vm6, %v1754_v29, %v373_v24 }
 0x523   :  { %377 = vrot.lane.b32.xlu0 %v375_v30, %s1567_s14 }
 0x590   :  { %v452_v49 = vpop.permute.xlu1 %451 }
 0x595   :  { %v378_v31 = vpop.permute.xlu0 %377 }
 0x596   :  { %380 = vst.msk [vmem:[#allocation4] sm:$0xff] %vm156_vm0, %v378_v31 }
 0x59d   :  { %v394_v33 = vld [vmem:[#allocation4] sm:$0xff] }
 0x59e   :  { %v398_v34 = vpack.c.bf16 %v394_v33, %v394_v33  ;;  %478 = vrot.lane.b32.xlu1 %v394_v33, %s1568_s17 }
 0x5a0   :  { %1379 = vmatmul.mubr.msk.bf16.vlgmr.msra.gmra.mrb[4].mxu0 %vm156_vm0, %v398_v34 }
 0x5a1   :  { %1391 = vmatpush3.bf16.msra.mxu0 %v1642_v4  ;;  %1394 = vmatprep.mubr.msk.bf16.mxu0 %vm1564_vm2, %v1563_v1  ;;  %v1772_v50 = vpop.permute.xlu1 %474 }
 0x5a2   :  { %1392 = vmatprep.subr.bf16.mxu0 %v1563_v1  ;;  %vm476_vm8 = vcmp.eq.s32.totalorder %v1772_v50, 1 }
 0x5a5   :  { %1393 = vmatpush3.bf16.msra.mxu0 %v1659_v7 }
 0x5a6   :  { %1406 = vmatprep.subr.bf16.mxu0 %v1563_v1 }
 0x610   :  { %v479_v56 = vpop.permute.xlu1 %478 }
 0x673   :  { %v436_v35 = vpop.f32.mrb[4].mxu0 }
 0x674   :  { %v442_v36 = vadd.f32 %v436_v35, %v1690_v17  ;;  %v1380_v37 = vpop.f32.mrb[5].mxu0 }
 0x675   :  { %v439_v39 = vpop.f32.mrb[6].mxu0 }
 0x676   :  { %1483 = vtanh.f32 %v442_v36  ;;  %v1381_v40 = vpop.f32.mrb[7].mxu0  ;;  %v1287_v42 = vmul.f32 -1.442695, %v442_v36  ;;  %v684_v36 = vsel %vm683_vm11, 1, %v1565_v32 }
 0x678   :  { %1485 = vpow2.f32 %v1287_v42 }
 0x680   :  { %v1484_v41 = vpop.eup %1483 }
 0x681   :  { %456 = vrot.lane.b32.xlu0 %v1484_v41, %s1566_s4 }
 0x682   :  { %v1486_v43 = vpop.eup %1485 }
 0x683   :  { %v446_v44 = vadd.f32 1.0, %v1486_v43 }
 0x685   :  { %1487 = vrcp.f32 %v446_v44 }
 0x68f   :  { %v1488_v45 = vpop.eup %1487 }
 0x690   :  { %v454_v17 = vmul.f32 %v1488_v45, %v452_v49 }
 0x6f3   :  { %v457_v46 = vpop.permute.xlu0 %456 }
 0x6f4   :  { %v459_v47 = vmul.f32 %v1488_v45, %v457_v46 }
 0x6f6   :  { %461 = vrot.lane.b32.xlu0 %v459_v47, %s1567_s14 }
 0x768   :  { %v462_v51 = vpop.permute.xlu0 %461 }
 0x769   :  { %v464_v53 = vadd.f32 %v462_v51, %v454_v17 }
 0x76b   :  { %1489 = vtanh.f32 %v464_v53  ;;  %v487_v54 = vsel %vm476_vm8, %v464_v53, %v452_v49 }
 0x76c   :  { %489 = vrot.lane.b32.xlu1 %v487_v54, %s1568_s17 }
 0x775   :  { %v1490_v55 = vpop.eup %1489 }
 0x776   :  { %467 = vrot.lane.b32.xlu0 %v1490_v55, %s1566_s4 }
 0x7de   :  { %v490_v57 = vpop.permute.xlu1 %489 }
 0x7df   :  { %492 = vst.msk [vmem:[#allocation5] sm:$0xff] %vm156_vm0, %v490_v57 }
 0x7e6   :  { %v501_v58 = vld [vmem:[#allocation5] sm:$0xff] }
 0x7e7   :  { %557 = vrot.lane.b32.xlu1 %v501_v58, %s1567_s14 }
 0x7e8   :  { %v468_v59 = vpop.permute.xlu0 %467 }
 0x7e9   :  { %v1783_v61 = vmul.f32 %v1488_v45, %v468_v59 }
 0x7eb   :  { %580 = vperm.xlu1 %1458, %v578_v60   ;;  %v481_v62 = vsel %vm476_vm8, %v1783_v61, %v479_v56 }
 0x7ec   :  { %483 = vrot.lane.b32.xlu0 %v481_v62, %s1567_s14 }
 0x859   :  { %v558_v24 = vpop.permute.xlu1 %557 }
 0x85e   :  { %v484_v63 = vpop.permute.xlu0 %483 }
 0x85f   :  { %486 = vst.msk [vmem:[#allocation4] sm:$0xff] %vm156_vm0, %v484_v63 }
 0x866   :  { %v500_v0 = vld [vmem:[#allocation4] sm:$0xff] }
 0x867   :  { %v504_v2 = vpack.c.bf16 %v500_v0, %v500_v0  ;;  %584 = vrot.lane.b32.xlu1 %v500_v0, %s1568_s17 }
 0x869   :  { %1387 = vmatmul.mubr.msk.bf16.vlgmr.msra.gmra.mrb[12].mxu1 %vm156_vm0, %v504_v2 }
 0x86a   :  { %1399 = vmatpush3.bf16.msra.mxu1 %v1642_v4  ;;  %1402 = vmatprep.mubr.msk.bf16.mxu1 %vm1564_vm2, %v1563_v1  ;;  %v1801_v25 = vpop.permute.xlu1 %580 }
 0x86b   :  { %1400 = vmatprep.subr.bf16.mxu1 %v1563_v1  ;;  %vm582_vm10 = vcmp.eq.s32.totalorder %v1801_v25, 1 }
 0x86e   :  { %1401 = vmatpush3.bf16.msra.mxu1 %v1659_v7 }
 0x86f   :  { %1414 = vmatprep.subr.bf16.mxu1 %v1563_v1 }
 0x8d9   :  { %v585_v31 = vpop.permute.xlu1 %584 }
 0x93c   :  { %v542_v3 = vpop.f32.mrb[12].mxu1 }
 0x93d   :  { %v548_v5 = vadd.f32 %v542_v3, %v1696_v23  ;;  %v1388_v6 = vpop.f32.mrb[13].mxu1 }
 0x93e   :  { %v545_v8 = vpop.f32.mrb[14].mxu1  ;;  %v790_v6 = vsel %vm789_vm13, 1, %v1565_v32 }
 0x93f   :  { %1491 = vtanh.f32 %v548_v5  ;;  %v1389_v9 = vpop.f32.mrb[15].mxu1  ;;  %v1289_v11 = vmul.f32 -1.442695, %v548_v5 }
 0x941   :  { %1493 = vpow2.f32 %v1289_v11 }
 0x949   :  { %v1492_v10 = vpop.eup %1491 }
 0x94a   :  { %562 = vrot.lane.b32.xlu0 %v1492_v10, %s1566_s4 }
 0x94b   :  { %v1494_v14 = vpop.eup %1493 }
 0x94c   :  { %v552_v16 = vadd.f32 1.0, %v1494_v14 }
 0x94e   :  { %1495 = vrcp.f32 %v552_v16 }
 0x958   :  { %v1496_v18 = vpop.eup %1495 }
 0x959   :  { %v560_v23 = vmul.f32 %v1496_v18, %v558_v24 }
 0x9bc   :  { %v563_v20 = vpop.permute.xlu0 %562 }
 0x9bd   :  { %v565_v21 = vmul.f32 %v1496_v18, %v563_v20 }
 0x9bf   :  { %567 = vrot.lane.b32.xlu0 %v565_v21, %s1567_s14 }
 0xa31   :  { %v568_v26 = vpop.permute.xlu0 %567 }
 0xa32   :  { %v570_v27 = vadd.f32 %v568_v26, %v560_v23 }
 0xa34   :  { %1497 = vtanh.f32 %v570_v27  ;;  %v593_v28 = vsel %vm582_vm10, %v570_v27, %v558_v24 }
 0xa35   :  { %595 = vrot.lane.b32.xlu1 %v593_v28, %s1568_s17 }
 0xa3e   :  { %v1498_v30 = vpop.eup %1497 }
 0xa3f   :  { %573 = vrot.lane.b32.xlu0 %v1498_v30, %s1566_s4 }
 0xaa7   :  { %v596_v33 = vpop.permute.xlu1 %595 }
 0xaa8   :  { %598 = vst.msk [vmem:[#allocation5] sm:$0xff] %vm156_vm0, %v596_v33 }
 0xaaf   :  { %v607_v34 = vld [vmem:[#allocation5] sm:$0xff] }
 0xab0   :  { %663 = vrot.lane.b32.xlu1 %v607_v34, %s1567_s14 }
 0xab1   :  { %v574_v35 = vpop.permute.xlu0 %573 }
 0xab2   :  { %v1812_v37 = vmul.f32 %v1496_v18, %v574_v35 }
 0xab4   :  { %686 = vperm.xlu1 %1458, %v684_v36   ;;  %v587_v39 = vsel %vm582_vm10, %v1812_v37, %v585_v31 }
 0xab5   :  { %589 = vrot.lane.b32.xlu0 %v587_v39, %s1567_s14 }
 0xb22   :  { %v664_v57 = vpop.permute.xlu1 %663 }
 0xb27   :  { %v590_v40 = vpop.permute.xlu0 %589 }
 0xb28   :  { %592 = vst.msk [vmem:[#allocation4] sm:$0xff] %vm156_vm0, %v590_v40 }
 0xb2f   :  { %v606_v41 = vld [vmem:[#allocation4] sm:$0xff] }
 0xb30   :  { %v610_v42 = vpack.c.bf16 %v606_v41, %v606_v41  ;;  %690 = vrot.lane.b32.xlu1 %v606_v41, %s1568_s17 }
 0xb32   :  { %1395 = vmatmul.mubr.msk.bf16.vlgmr.msra.gmra.mrb[8].mxu0 %vm156_vm0, %v610_v42 }
 0xb33   :  { %1407 = vmatpush3.bf16.msra.mxu0 %v1642_v4  ;;  %1410 = vmatprep.mubr.msk.bf16.mxu0 %vm1564_vm2, %v1563_v1  ;;  %v1829_v58 = vpop.permute.xlu1 %686 }
 0xb34   :  { %1408 = vmatprep.subr.bf16.mxu0 %v1563_v1  ;;  %vm688_vm12 = vcmp.eq.s32.totalorder %v1829_v58, 1 }
 0xb37   :  { %1409 = vmatpush3.bf16.msra.mxu0 %v1659_v7 }
 0xba2   :  { %v691_v0 = vpop.permute.xlu1 %690 }
 0xc05   :  { %v648_v43 = vpop.f32.mrb[8].mxu0 }
 0xc06   :  { %v654_v44 = vadd.f32 %v648_v43, %v1688_v15  ;;  %v1396_v45 = vpop.f32.mrb[9].mxu0  ;;  %v896_v43 = vsel %vm895_vm15, 1, %v1565_v32 }
 0xc07   :  { %v651_v46 = vpop.f32.mrb[10].mxu0 }
 0xc08   :  { %1499 = vtanh.f32 %v654_v44  ;;  %v1397_v47 = vpop.f32.mrb[11].mxu0  ;;  %v1291_v17 = vmul.f32 -1.442695, %v654_v44 }
 0xc0a   :  { %1501 = vpow2.f32 %v1291_v17 }
 0xc12   :  { %v1500_v49 = vpop.eup %1499 }
 0xc13   :  { %668 = vrot.lane.b32.xlu0 %v1500_v49, %s1566_s4 }
 0xc14   :  { %v1502_v51 = vpop.eup %1501 }
 0xc15   :  { %v658_v53 = vadd.f32 1.0, %v1502_v51 }
 0xc17   :  { %1503 = vrcp.f32 %v658_v53 }
 0xc21   :  { %v1504_v54 = vpop.eup %1503 }
 0xc22   :  { %v666_v15 = vmul.f32 %v1504_v54, %v664_v57 }
 0xc85   :  { %v669_v55 = vpop.permute.xlu0 %668 }
 0xc86   :  { %v671_v56 = vmul.f32 %v1504_v54, %v669_v55 }
 0xc88   :  { %673 = vrot.lane.b32.xlu0 %v671_v56, %s1567_s14 }
 0xcfa   :  { %v674_v59 = vpop.permute.xlu0 %673 }
 0xcfb   :  { %v676_v60 = vadd.f32 %v674_v59, %v666_v15 }
 0xcfd   :  { %1505 = vtanh.f32 %v676_v60  ;;  %v699_v62 = vsel %vm688_vm12, %v676_v60, %v664_v57 }
 0xcfe   :  { %701 = vrot.lane.b32.xlu1 %v699_v62, %s1568_s17 }
 0xd07   :  { %v1506_v63 = vpop.eup %1505 }
 0xd08   :  { %679 = vrot.lane.b32.xlu0 %v1506_v63, %s1566_s4 }
 0xd70   :  { %v702_v2 = vpop.permute.xlu1 %701 }
 0xd71   :  { %704 = vst.msk [vmem:[#allocation5] sm:$0xff] %vm156_vm0, %v702_v2 }
 0xd78   :  { %v713_v3 = vld [vmem:[#allocation5] sm:$0xff] }
 0xd79   :  { %769 = vrot.lane.b32.xlu1 %v713_v3, %s1567_s14 }
 0xd7a   :  { %v680_v5 = vpop.permute.xlu0 %679 }
 0xd7b   :  { %v1840_v8 = vmul.f32 %v1504_v54, %v680_v5 }
 0xd7d   :  { %792 = vperm.xlu1 %1458, %v790_v6   ;;  %v693_v9 = vsel %vm688_vm12, %v1840_v8, %v691_v0 }
 0xd7e   :  { %695 = vrot.lane.b32.xlu0 %v693_v9, %s1567_s14 }
 0xdf0   :  { %v696_v10 = vpop.permute.xlu0 %695 }
 0xdf1   :  { %698 = vst.msk [vmem:[#allocation4] sm:$0xff] %vm156_vm0, %v696_v10 }
 0xdf8   :  { %v712_v11 = vld [vmem:[#allocation4] sm:$0xff] }
 0xdf9   :  { %v716_v14 = vpack.c.bf16 %v712_v11, %v712_v11  ;;  %796 = vrot.lane.b32.xlu1 %v712_v11, %s1568_s17 }
 0xdfb   :  { %1403 = vmatmul.mubr.msk.bf16.vlgmr.msra.gmra.mrb[16].mxu1 %vm156_vm0, %v716_v14 }
 0xdfc   :  { %1415 = vmatpush3.bf16.msra.mxu1 %v1642_v4  ;;  %1418 = vmatprep.mubr.msk.bf16.mxu1 %vm1564_vm2, %v1563_v1  ;;  %vm1001_vm2 = vcmp.gt.s32.totalorder %v1707_v38, 7  ;;  %v493_v38 = vsel %vm476_vm8, %v1783_v61, 0.0 }
 0xdfd   :  { %1416 = vmatprep.subr.bf16.mxu1 %v1563_v1 }
 0xe00   :  { %1417 = vmatpush3.bf16.msra.mxu1 %v1659_v7  ;;  %v770_v7 = vpop.permute.xlu1 %769 }
 0xe04   :  { %v1857_v31 = vpop.permute.xlu1 %792 }
 0xe05   :  { %vm794_vm14 = vcmp.eq.s32.totalorder %v1857_v31, 1 }
 0xe6b   :  { %v797_v39 = vpop.permute.xlu1 %796 }
 0xece   :  { %v754_v16 = vpop.f32.mrb[16].mxu1 }
 0xecf   :  { %v760_v18 = vadd.f32 %v754_v16, %v1694_v22  ;;  %v1404_v20 = vpop.f32.mrb[17].mxu1 }
 0xed0   :  { %v757_v21 = vpop.f32.mrb[18].mxu1 }
 0xed1   :  { %1507 = vtanh.f32 %v760_v18  ;;  %v1405_v24 = vpop.f32.mrb[19].mxu1  ;;  %v1293_v26 = vmul.f32 -1.442695, %v760_v18  ;;  %v1002_v18 = vsel %vm1001_vm2, 1, %v1565_v32  ;;  %v705_v32 = vsel %vm688_vm12, %v1840_v8, 0.0 }
 0xed2   :  { %v282_v24 = vsel %vm265_vm4, %v1721_v52, 0.0 }
 0xed3   :  { %1509 = vpow2.f32 %v1293_v26 }
 0xedb   :  { %v1508_v23 = vpop.eup %1507 }
 0xedc   :  { %774 = vrot.lane.b32.xlu0 %v1508_v23, %s1566_s4 }
 0xedd   :  { %v1510_v4 = vpop.eup %1509 }
 0xede   :  { %v764_v27 = vadd.f32 1.0, %v1510_v4 }
 0xee0   :  { %1511 = vrcp.f32 %v764_v27 }
 0xeea   :  { %v1512_v28 = vpop.eup %1511 }
 0xeeb   :  { %v772_v22 = vmul.f32 %v1512_v28, %v770_v7 }
 0xf4e   :  { %v775_v30 = vpop.permute.xlu0 %774 }
 0xf4f   :  { %v777_v1 = vmul.f32 %v1512_v28, %v775_v30 }
 0xf51   :  { %779 = vrot.lane.b32.xlu0 %v777_v1, %s1567_s14 }
 0xfc3   :  { %v780_v33 = vpop.permute.xlu0 %779 }
 0xfc4   :  { %v782_v34 = vadd.f32 %v780_v33, %v772_v22 }
 0xfc6   :  { %1513 = vtanh.f32 %v782_v34  ;;  %v805_v35 = vsel %vm794_vm14, %v782_v34, %v770_v7 }
 0xfc7   :  { %807 = vrot.lane.b32.xlu1 %v805_v35, %s1568_s17 }
 0xfd0   :  { %v1514_v36 = vpop.eup %1513 }
 0xfd1   :  { %785 = vrot.lane.b32.xlu0 %v1514_v36, %s1566_s4 }
0x1039   :  { %v808_v40 = vpop.permute.xlu1 %807 }
0x103a   :  { %810 = vst.msk [vmem:[#allocation5] sm:$0xff] %vm156_vm0, %v808_v40 }
0x1041   :  { %v819_v41 = vld [vmem:[#allocation5] sm:$0xff] }
0x1042   :  { %875 = vrot.lane.b32.xlu1 %v819_v41, %s1567_s14 }
0x1043   :  { %v786_v42 = vpop.permute.xlu0 %785 }
0x1044   :  { %v1868_v44 = vmul.f32 %v1512_v28, %v786_v42 }
0x1046   :  { %898 = vperm.xlu1 %1458, %v896_v43   ;;  %v799_v45 = vsel %vm794_vm14, %v1868_v44, %v797_v39 }
0x1047   :  { %801 = vrot.lane.b32.xlu0 %v799_v45, %s1567_s14 }
0x10b4   :  { %v876_v0 = vpop.permute.xlu1 %875 }
0x10b9   :  { %v802_v46 = vpop.permute.xlu0 %801 }
0x10ba   :  { %804 = vst.msk [vmem:[#allocation4] sm:$0xff] %vm156_vm0, %v802_v46  ;;  %v1038_v46 = vld [vmem:[%s2045_s5] sm:$0xff] }
0x10c1   :  { %v818_v47 = vld [vmem:[#allocation4] sm:$0xff] }
0x10c2   :  { %v822_v49 = vpack.c.bf16 %v818_v47, %v818_v47  ;;  %902 = vrot.lane.b32.xlu1 %v818_v47, %s1568_s17  ;;  %v1039_v47 = vld [vmem:[%s2045_s5 + $0x8] sm:$0xff] }
0x10c4   :  { %1411 = vmatmul.mubr.msk.bf16.vlgmr.msra.gmra.mrb[12].mxu0 %vm156_vm0, %v822_v49  ;;  %v1442_v49 = vpack.c.bf16 %v1039_v47, %v1038_v46 }
0x10c5   :  { %v899_v2 = vpop.permute.xlu1 %898 }
0x10c6   :  { %vm900_vm1 = vcmp.eq.s32.totalorder %v899_v2, 1  ;;  %1443 = vmatprep.subr.bf16.mxu0 %v1442_v49 }
0x10c7   :  { %1445 = vmatpush3.bf16.msra.mxu0 %v1442_v49 }
0x1134   :  { %v903_v10 = vpop.permute.xlu1 %902 }
0x1197   :  { %v860_v17 = vpop.f32.mrb[12].mxu0 }
0x1198   :  { %v866_v51 = vadd.f32 %v860_v17, %v1686_v12  ;;  %v1412_v53 = vpop.f32.mrb[13].mxu0  ;;  %v1040_v17 = vld [vmem:[%s2045_s5 + $0x10] sm:$0xff] }
0x1199   :  { %v863_v54 = vpop.f32.mrb[14].mxu0 }
0x119a   :  { %1515 = vtanh.f32 %v866_v51  ;;  %v1413_v55 = vpop.f32.mrb[15].mxu0  ;;  %v1295_v57 = vmul.f32 -1.442695, %v866_v51  ;;  %v1041_v51 = vld [vmem:[%s2045_s5 + $0x18] sm:$0xff] }
0x119b   :  { %v1446_v53 = vpack.c.bf16 %v1041_v51, %v1040_v17  ;;  %v387_v55 = vsel %vm370_vm6, %v1754_v29, 0.0 }
0x119c   :  { %1517 = vpow2.f32 %v1295_v57  ;;  %v811_v57 = vsel %vm794_vm14, %v1868_v44, 0.0 }
0x119d   :  { %1447 = vmatprep.subr.bf16.mxu0 %v1446_v53 }
0x119e   :  { %1449 = vmatpush3.bf16.msra.mxu0 %v1446_v53 }
0x11a4   :  { %v1516_v56 = vpop.eup %1515 }
0x11a5   :  { %880 = vrot.lane.b32.xlu0 %v1516_v56, %s1566_s4  ;;  %v599_v56 = vsel %vm582_vm10, %v1812_v37, 0.0 }
0x11a6   :  { %v1518_v15 = vpop.eup %1517 }
0x11a7   :  { %v870_v59 = vadd.f32 1.0, %v1518_v15 }
0x11a9   :  { %1519 = vrcp.f32 %v870_v59 }
0x11b3   :  { %v1520_v60 = vpop.eup %1519 }
0x11b4   :  { %v878_v12 = vmul.f32 %v1520_v60, %v876_v0 }
0x1217   :  { %v881_v62 = vpop.permute.xlu0 %880 }
0x1218   :  { %v883_v63 = vmul.f32 %v1520_v60, %v881_v62 }
0x121a   :  { %885 = vrot.lane.b32.xlu0 %v883_v63, %s1567_s14 }
0x128c   :  { %v886_v3 = vpop.permute.xlu0 %885 }
0x128d   :  { %v888_v5 = vadd.f32 %v886_v3, %v878_v12  ;;  %v1298_v3 = vld [vmem:[%s2046_s6] ss:$0 sm:$0xff] }
0x128f   :  { %1521 = vtanh.f32 %v888_v5  ;;  %v911_v6 = vsel %vm900_vm1, %v888_v5, %v876_v0 }
0x1290   :  { %913 = vrot.lane.b32.xlu1 %v911_v6, %s1568_s17 }
0x1299   :  { %v1522_v9 = vpop.eup %1521 }
0x129a   :  { %891 = vrot.lane.b32.xlu0 %v1522_v9, %s1566_s4 }
0x1302   :  { %v914_v11 = vpop.permute.xlu1 %913 }
0x1303   :  { %916 = vst.msk [vmem:[#allocation5] sm:$0xff] %vm156_vm0, %v914_v11 }
0x130a   :  { %v925_v14 = vld [vmem:[#allocation5] sm:$0xff] }
0x130b   :  { %981 = vrot.lane.b32.xlu1 %v925_v14, %s1567_s14 }
0x130c   :  { %v892_v16 = vpop.permute.xlu0 %891 }
0x130d   :  { %v894_v20 = vmul.f32 %v1520_v60, %v892_v16 }
0x130f   :  { %1004 = vperm.xlu1 %1458, %v1002_v18   ;;  %v905_v21 = vsel %vm900_vm1, %v894_v20, %v903_v10  ;;  %v917_v23 = vsel %vm900_vm1, %v894_v20, 0.0 }
0x1310   :  { %907 = vrot.lane.b32.xlu0 %v905_v21, %s1567_s14 }
0x1313   :  { %284 = vrot.lane.b32.xlu1 %v282_v24, %s1567_s14 }
0x1317   :  { %495 = vrot.lane.b32.xlu1 %v493_v38, %s1567_s14 }
0x131b   :  { %707 = vrot.lane.b32.xlu1 %v705_v32, %s1567_s14 }
0x131f   :  { %919 = vrot.lane.b32.xlu1 %v917_v23, %s1567_s14 }
0x137d   :  { %v1904_v52 = vpop.permute.xlu1 %981 }
0x1382   :  { %v908_v48 = vpop.permute.xlu0 %907 }
0x1383   :  { %910 = vst.msk [vmem:[#allocation4] sm:$0xff] %vm156_vm0, %v908_v48 }
0x138a   :  { %v1906_v26 = vld [vmem:[#allocation4] sm:$0xff] }
0x138b   :  { %v928_v50 = vpack.c.bf16 %v1906_v26, %v1906_v26 }
0x138d   :  { %1419 = vmatmul.mubr.msk.bf16.vlgmr.msra.gmra.mrb[20].mxu1 %vm156_vm0, %v928_v50 }
0x138e   :  { %v1911_v61 = vpop.permute.xlu1 %1004 }
0x138f   :  { %vm1006_vm3 = vcmp.eq.s32.totalorder %v1911_v61, 1 }
0x1392   :  { %v285_v58 = vpop.permute.xlu1 %284 }
0x1393   :  { %287 = vst.msk [vmem:[#allocation3] sm:$0xff] %vm156_vm0, %v285_v58 }
0x1396   :  { %v496_v8 = vpop.permute.xlu1 %495 }
0x1397   :  { %499 = vst.msk [vmem:[#allocation3 + $0x10] sm:$0xff] %vm156_vm0, %v496_v8 }
0x139a   :  { %v708_v4 = vpop.permute.xlu1 %707  ;;  %v1030_v27 = vld [vmem:[#allocation3] sm:$0xff] }
0x139b   :  { %711 = vst.msk [vmem:[#allocation3 + $0x20] sm:$0xff] %vm156_vm0, %v708_v4  ;;  %1430 = vmatprep.mubr.msk.f32.mxu0 %vm156_vm0, %v1030_v27 }
0x139e   :  { %v920_v28 = vpop.permute.xlu1 %919  ;;  %v1032_v44 = vld [vmem:[#allocation3 + $0x10] sm:$0xff] }
0x139f   :  { %923 = vst.msk [vmem:[#allocation3 + $0x30] sm:$0xff] %vm156_vm0, %v920_v28 }
0x13a2   :  { %v1034_v62 = vld [vmem:[#allocation3 + $0x20] sm:$0xff] }
0x13a6   :  { %v1036_v0 = vld [vmem:[#allocation3 + $0x30] sm:$0xff] }
0x1460   :  { %v966_v30 = vpop.f32.mrb[20].mxu1 }
0x1461   :  { %v972_v1 = vadd.f32 %v966_v30, %v1692_v19  ;;  %v1420_v7 = vpop.f32.mrb[21].mxu1 }
0x1462   :  { %v969_v22 = vpop.f32.mrb[22].mxu1 }
0x1463   :  { %1523 = vtanh.f32 %v972_v1  ;;  %v1421_v33 = vpop.f32.mrb[23].mxu1  ;;  %v1297_v35 = vmul.f32 -1.442695, %v972_v1 }
0x1465   :  { %1525 = vpow2.f32 %v1297_v35 }
0x146d   :  { %v1524_v34 = vpop.eup %1523 }
0x146e   :  { %986 = vrot.lane.b32.xlu0 %v1524_v34, %s1566_s4 }
0x146f   :  { %v1526_v36 = vpop.eup %1525 }
0x1470   :  { %v976_v39 = vadd.f32 1.0, %v1526_v36 }
0x1472   :  { %1527 = vrcp.f32 %v976_v39 }
0x147c   :  { %v1528_v40 = vpop.eup %1527 }
0x147d   :  { %v984_v43 = vmul.f32 %v1528_v40, %v1904_v52 }
0x14e0   :  { %v987_v41 = vpop.permute.xlu0 %986 }
0x14e1   :  { %v989_v42 = vmul.f32 %v1528_v40, %v987_v41 }
0x14e3   :  { %991 = vrot.lane.b32.xlu0 %v989_v42, %s1567_s14 }
0x1555   :  { %v992_v19 = vpop.permute.xlu0 %991 }
0x1556   :  { %v1922_v45 = vadd.f32 %v992_v19, %v984_v43 }
0x1558   :  { %1529 = vtanh.f32 %v1922_v45 }
0x1562   :  { %v1530_v54 = vpop.eup %1529 }
0x1563   :  { %997 = vrot.lane.b32.xlu0 %v1530_v54, %s1566_s4 }
0x1567   :  { %389 = vrot.lane.b32.xlu0 %v387_v55, %s1567_s14 }
0x156b   :  { %601 = vrot.lane.b32.xlu0 %v599_v56, %s1567_s14 }
0x156f   :  { %813 = vrot.lane.b32.xlu0 %v811_v57, %s1567_s14 }
0x15d5   :  { %v998_v15 = vpop.permute.xlu0 %997 }
0x15d6   :  { %v1950_v59 = vmul.f32 %v1528_v40, %v998_v15 }
0x15d8   :  { %v1023_v13 = vsel %vm1006_vm3, %v1950_v59, 0.0 }
0x15d9   :  { %v390_v29 = vpop.permute.xlu0 %389  ;;  %1025 = vrot.lane.b32.xlu0 %v1023_v13, %s1567_s14 }
0x15da   :  { %393 = vst.msk [vmem:[#allocation3 + $0x8] sm:$0xff] %vm156_vm0, %v390_v29 }
0x15dd   :  { %v602_v25 = vpop.permute.xlu0 %601 }
0x15de   :  { %605 = vst.msk [vmem:[#allocation3 + $0x18] sm:$0xff] %vm156_vm0, %v602_v25 }
0x15e1   :  { %v814_v37 = vpop.permute.xlu0 %813  ;;  %v1031_v31 = vld [vmem:[#allocation3 + $0x8] sm:$0xff] }
0x15e2   :  { %817 = vst.msk [vmem:[#allocation3 + $0x28] sm:$0xff] %vm156_vm0, %v814_v37  ;;  %1431 = vmatmul.mubr.msk.f32.vlgmr.msra.gmra.mrb[16].mxu0 %vm156_vm0, %v1031_v31  ;;  %v1017_v37 = vsel %vm1006_vm3, %v1922_v45, %v1904_v52 }
0x15e3   :  { %1433 = vmatprep.mubr.msk.f32.mxu0 %vm156_vm0, %v1032_v44 }
0x15e5   :  { %v1033_v60 = vld [vmem:[#allocation3 + $0x18] sm:$0xff] }
0x15e6   :  { %1434 = vmatmul.mubr.msk.f32.gmra.mrb[18].mxu0 %vm156_vm0, %v1033_v60 }
0x15e7   :  { %1436 = vmatprep.mubr.msk.f32.mxu0 %vm156_vm0, %v1034_v62 }
0x15e9   :  { %v1035_v63 = vld [vmem:[#allocation3 + $0x28] sm:$0xff] }
0x15ea   :  { %1437 = vmatmul.mubr.msk.f32.gmra.mrb[20].mxu0 %vm156_vm0, %v1035_v63 }
0x15eb   :  { %1439 = vmatprep.mubr.msk.f32.mxu0 %vm156_vm0, %v1036_v0 }
0x164b   :  { %v1026_v2 = vpop.permute.xlu0 %1025 }
0x164c   :  { %1029 = vst.msk [vmem:[#allocation3 + $0x38] sm:$0xff] %vm156_vm0, %v1026_v2 }
0x1653   :  { %v1037_v12 = vld [vmem:[#allocation3 + $0x38] sm:$0xff] }
0x1654   :  { %1440 = vmatmul.mubr.msk.f32.gmra.mrb[22].mxu0 %vm156_vm0, %v1037_v12 }
0x16b5   :  { %v1432_v5 = vpop.f32.mrb[16].mxu0 }
0x16b6   :  { %v1145_v6 = vadd.f32 %v1432_v5, %v1298_v3  ;;  %v1139_v9 = vpop.f32.mrb[17].mxu0 }
0x16b7   :  { %v1140_v10 = vadd.f32 %v1298_v3, %v1139_v9 }
0x16b8   :  { %1180 = vmax.xlane.f32.xlu0 %v1145_v6 }
0x16b9   :  { %1178 = vmax.xlane.f32.xlu1 %v1140_v10  ;;  %v1435_v11 = vpop.f32.mrb[18].mxu0 }
0x16ba   :  { %v1155_v14 = vadd.f32 %v1435_v11, %v1298_v3  ;;  %v1149_v16 = vpop.f32.mrb[19].mxu0 }
0x16bb   :  { %v1150_v18 = vadd.f32 %v1298_v3, %v1149_v16 }
0x16bd   :  { %1184 = vmax.xlane.f32.xlu1 %v1155_v14  ;;  %1182 = vmax.xlane.f32.xlu0 %v1150_v18  ;;  %v1438_v20 = vpop.f32.mrb[20].mxu0 }
0x16be   :  { %v1165_v21 = vadd.f32 %v1438_v20, %v1298_v3  ;;  %v1159_v24 = vpop.f32.mrb[21].mxu0 }
0x16bf   :  { %v1160_v38 = vadd.f32 %v1298_v3, %v1159_v24 }
0x16c1   :  { %1188 = vmax.xlane.f32.xlu1 %v1165_v21  ;;  %1186 = vmax.xlane.f32.xlu0 %v1160_v38 }
0x1727   :  { %v1441_v32 = vpop.f32.mrb[22].mxu0 }
0x1728   :  { %v1175_v23 = vadd.f32 %v1441_v32, %v1298_v3  ;;  %v1169_v48 = vpop.f32.mrb[23].mxu0 }
0x1729   :  { %v1170_v50 = vadd.f32 %v1298_v3, %v1169_v48 }
0x172a   :  { %1192 = vmax.xlane.f32.xlu1 %v1175_v23 }
0x172b   :  { %1190 = vmax.xlane.f32.xlu0 %v1170_v50 }
0x1741   :  { %1008 = vrot.lane.b32.xlu0 %v1906_v26, %s1568_s17 }
0x1745   :  { %v1181_v58 = vpop.xlane.xlu0 %1180 }
0x1746   :  { %v1179_v8 = vpop.xlane.xlu1 %1178  ;;  %v1973_v4 = vsub.f32 %v1145_v6, %v1181_v58 }
0x1747   :  { %v1975_v27 = vsub.f32 %v1140_v10, %v1179_v8 }
0x1748   :  { %v1204_v1 = vmul.f32 1.442695, %v1973_v4 }
0x1749   :  { %v1202_v28 = vmul.f32 1.442695, %v1975_v27 }
0x174a   :  { %v1183_v30 = vpop.xlane.xlu0 %1182  ;;  %v1185_v22 = vpop.xlane.xlu1 %1184 }
0x174b   :  { %1531 = vpow2.f32 %v1202_v28  ;;  %v1979_v7 = vsub.f32 %v1150_v18, %v1183_v30  ;;  %v1982_v34 = vsub.f32 %v1155_v14, %v1185_v22 }
0x174c   :  { %1533 = vpow2.f32 %v1204_v1 }
0x174d   :  { %v1206_v33 = vmul.f32 1.442695, %v1979_v7  ;;  %v1208_v35 = vmul.f32 1.442695, %v1982_v34 }
0x174e   :  { %v1187_v26 = vpop.xlane.xlu0 %1186  ;;  %v1189_v39 = vpop.xlane.xlu1 %1188 }
0x174f   :  { %1535 = vpow2.f32 %v1206_v33  ;;  %v1985_v36 = vsub.f32 %v1160_v38, %v1187_v26  ;;  %v1988_v42 = vsub.f32 %v1165_v21, %v1189_v39 }
0x1750   :  { %1537 = vpow2.f32 %v1208_v35 }
0x1751   :  { %v1210_v41 = vmul.f32 1.442695, %v1985_v36  ;;  %v1212_v19 = vmul.f32 1.442695, %v1988_v42 }
0x1753   :  { %1539 = vpow2.f32 %v1210_v41 }
0x1754   :  { %1541 = vpow2.f32 %v1212_v19 }
0x1755   :  { %v1532_v40 = vpop.eup %1531 }
0x1756   :  { %1218 = vadd.xlane.f32.xlu1 %v1532_v40  ;;  %v1534_v43 = vpop.eup %1533 }
0x1759   :  { %v1536_v46 = vpop.eup %1535 }
0x175a   :  { %1220 = vadd.xlane.f32.xlu1 %v1534_v43  ;;  %v1538_v47 = vpop.eup %1537 }
0x175d   :  { %v1540_v49 = vpop.eup %1539 }
0x175e   :  { %1222 = vadd.xlane.f32.xlu1 %v1536_v46  ;;  %v1542_v17 = vpop.eup %1541 }
0x1762   :  { %1224 = vadd.xlane.f32.xlu1 %v1538_v47 }
0x1766   :  { %1226 = vadd.xlane.f32.xlu1 %v1540_v49 }
0x176a   :  { %1228 = vadd.xlane.f32.xlu1 %v1542_v17 }
0x17b7   :  { %v1193_v51 = vpop.xlane.xlu1 %1192 }
0x17b8   :  { %v1991_v53 = vsub.f32 %v1175_v23, %v1193_v51  ;;  %v1191_v54 = vpop.xlane.xlu0 %1190 }
0x17b9   :  { %v1993_v55 = vsub.f32 %v1170_v50, %v1191_v54 }
0x17ba   :  { %v1216_v56 = vmul.f32 1.442695, %v1991_v53 }
0x17bb   :  { %v1214_v57 = vmul.f32 1.442695, %v1993_v55 }
0x17bc   :  { %1543 = vpow2.f32 %v1216_v56  ;;  %v1009_v29 = vpop.permute.xlu0 %1008 }
0x17bd   :  { %1545 = vpow2.f32 %v1214_v57  ;;  %v1011_v25 = vsel %vm1006_vm3, %v1950_v59, %v1009_v29 }
0x17c6   :  { %v1544_v15 = vpop.eup %1543 }
0x17c7   :  { %v1546_v13 = vpop.eup %1545  ;;  %1232 = vadd.xlane.f32.xlu1 %v1544_v15 }
0x17c8   :  { %1230 = vadd.xlane.f32.xlu0 %v1546_v13 }
0x17d8   :  { %1013 = vrot.lane.b32.xlu1 %v1011_v25, %s1567_s14 }
0x17dc   :  { %1019 = vrot.lane.b32.xlu1 %v1017_v37, %s1568_s17 }
0x17e3   :  { %v1219_v31 = vpop.xlane.xlu1 %1218 }
0x17e4   :  { %1547 = vlog2.f32 %v1219_v31 }
0x17e7   :  { %v1221_v44 = vpop.xlane.xlu1 %1220 }
0x17e8   :  { %1549 = vlog2.f32 %v1221_v44 }
0x17eb   :  { %v1223_v60 = vpop.xlane.xlu1 %1222 }
0x17ec   :  { %1551 = vlog2.f32 %v1223_v60 }
0x17ee   :  { %v1548_v62 = vpop.eup %1547 }
0x17ef   :  { %v1235_v63 = vmul.f32 0.6931472, %v1548_v62  ;;  %v1225_v0 = vpop.xlane.xlu1 %1224 }
0x17f0   :  { %1553 = vlog2.f32 %v1225_v0 }
0x17f1   :  { %v1250_v59 = vsub.f32 %v1975_v27, %v1235_v63 }
0x17f2   :  { %v1550_v2 = vpop.eup %1549 }
0x17f3   :  { %1258 = vst [vmem:[%s2047_s7] sm:$0xff] %v1250_v59  ;;  %v1237_v52 = vmul.f32 0.6931472, %v1550_v2  ;;  %v1227_v61 = vpop.xlane.xlu1 %1226 }
0x17f4   :  { %1555 = vlog2.f32 %v1227_v61 }
0x17f5   :  { %v1251_v45 = vsub.f32 %v1973_v4, %v1237_v52 }
0x17f6   :  { %v1552_v12 = vpop.eup %1551 }
0x17f7   :  { %1259 = vst [vmem:[%s2047_s7 + $0x8] sm:$0xff] %v1251_v45  ;;  %v1239_v3 = vmul.f32 0.6931472, %v1552_v12  ;;  %v1229_v5 = vpop.xlane.xlu1 %1228 }
0x17f8   :  { %1557 = vlog2.f32 %v1229_v5 }
0x17f9   :  { %v1252_v6 = vsub.f32 %v1979_v7, %v1239_v3 }
0x17fa   :  { %v1554_v9 = vpop.eup %1553 }
0x17fb   :  { %1260 = vst [vmem:[%s2047_s7 + $0x10] sm:$0xff] %v1252_v6  ;;  %v1241_v10 = vmul.f32 0.6931472, %v1554_v9 }
0x17fd   :  { %v1253_v11 = vsub.f32 %v1982_v34, %v1241_v10 }
0x17fe   :  { %v1556_v14 = vpop.eup %1555 }
0x17ff   :  { %1261 = vst [vmem:[%s2047_s7 + $0x18] sm:$0xff] %v1253_v11  ;;  %v1243_v16 = vmul.f32 0.6931472, %v1556_v14 }
0x1801   :  { %v1254_v18 = vsub.f32 %v1985_v36, %v1243_v16 }
0x1802   :  { %v1558_v20 = vpop.eup %1557 }
0x1803   :  { %1262 = vst [vmem:[%s2047_s7 + $0x20] sm:$0xff] %v1254_v18  ;;  %v1245_v21 = vmul.f32 0.6931472, %v1558_v20 }
0x1805   :  { %v1255_v24 = vsub.f32 %v1988_v42, %v1245_v21 }
0x1807   :  { %1263 = vst [vmem:[%s2047_s7 + $0x28] sm:$0xff] %v1255_v24 }
0x1854   :  { %v1233_v38 = vpop.xlane.xlu1 %1232 }
0x1855   :  { %1559 = vlog2.f32 %v1233_v38  ;;  %v1231_v32 = vpop.xlane.xlu0 %1230 }
0x1856   :  { %1561 = vlog2.f32 %v1231_v32 }
0x1858   :  { %v1014_v23 = vpop.permute.xlu1 %1013 }
0x1859   :  { %1016 = vst.msk [vmem:[#allocation4] sm:$0xff] %vm156_vm0, %v1014_v23 }
0x185c   :  { %v1020_v48 = vpop.permute.xlu1 %1019 }
0x185d   :  { %1022 = vst.msk [vmem:[#allocation5] sm:$0xff] %vm156_vm0, %v1020_v48 }
0x185f   :  { %v1560_v50 = vpop.eup %1559 }
0x1860   :  { %v1562_v58 = vpop.eup %1561  ;;  %v1249_v8 = vmul.f32 0.6931472, %v1560_v50 }
0x1861   :  { %v1247_v4 = vmul.f32 0.6931472, %v1562_v58 }
0x1862   :  { %v1257_v27 = vsub.f32 %v1991_v53, %v1249_v8 }
0x1863   :  { %v1256_v28 = vsub.f32 %v1993_v55, %v1247_v4 }
0x1864   :  { %1265 = vst [vmem:[%s2047_s7 + $0x38] sm:$0xff] %v1257_v27 }
0x1865   :  { %1264 = vst [vmem:[%s2047_s7 + $0x30] sm:$0xff] %v1256_v28 }

</bundles_post_ra>
